<compile_context>
chip_gen: v6e
topology: v6e:2x2x1
jax: 0.10.0
libtpu: 0.0.40
codegen_flags: <defaults>
</compile_context>

<pallas_src>
import functools

import jax
import jax.numpy as jnp
import numpy as np
from jax.experimental import pallas as pl
from jax.experimental.pallas import tpu as pltpu


# ----------------------------------------------------------------------------
# Fused kernel: whole LSTM stack + FC head. grid = (T // Tc,), sequential time.
# ----------------------------------------------------------------------------
def _lstm_fused_kernel(x_ref, wih0_ref, whh0_ref, wcat_ref, b0_ref, brest_ref,
                       wfc_ref, bfc_ref, out_ref, h_sc, c_sc, gx_sc):
    """One grid step = Tc time steps of the full L-layer LSTM stack.

    x_ref    : (Tc, B, H)   bf16 embedded inputs for this time block.
    wih0_ref : (H, 4H)      bf16 layer-0 input weight (transposed).
    whh0_ref : (H, 4H)      bf16 layer-0 hidden weight (transposed).
    wcat_ref : (max(L-1,1), 2H, 4H) bf16 stacked [W_ih; W_hh] for layers 1..L-1.
    b0_ref   : (1, 4H)      f32 combined layer-0 bias.
    brest_ref: (max(L-1,1), 1, 4H) f32 combined biases for layers 1..L-1.
    wfc_ref  : (H, out_dim), bfc_ref : (1, out_dim)   final linear head (f32).
    out_ref  : (B, out_dim) sigmoid(fc(h_T of last layer)).
    h_sc/c_sc: VMEM (L, B, H) f32 recurrent state, persistent across grid steps.
    gx_sc    : VMEM (Tc, B, 4H) f32 cached layer-0 input gates for this block.
    """
    blk = pl.program_id(0)

    L, B, H = h_sc.shape
    Tc = x_ref.shape[0]

    @pl.when(blk == 0)
    def _():
        h_sc[...] = jnp.zeros_like(h_sc)
        c_sc[...] = jnp.zeros_like(c_sc)

    # Layer-0 input projection for the whole time block: one batched MXU matmul
    # with M = Tc*B (bias folded in).  Not on the recurrence critical path.
    x_flat = x_ref[...].reshape(Tc * B, H)                                # bf16
    gx = jnp.dot(x_flat, wih0_ref[...], preferred_element_type=jnp.float32)
    gx_sc[...] = (gx + b0_ref[...]).reshape(Tc, B, 4 * H)                 # f32

    # Hoist the bias broadcasts out of the unrolled time loop (no CSE in JAX).
    biases = [jnp.broadcast_to(brest_ref[l], (B, 4 * H)) for l in range(L - 1)]

    # Initial state from VMEM scratch (f32), carried in vregs through the loop.
    h0 = tuple(h_sc[l] for l in range(L))
    c0 = tuple(c_sc[l] for l in range(L))

    def one_step(ts, carry):
        hs, cs = carry
        new_hs, new_cs = [], []
        h_below = None
        for l in range(L):                       # static (unrolled) layer loop
            if l == 0:
                # Precomputed input gates + recurrent matmul (bf16 MXU, f32 acc).
                gates = gx_sc[ts] + jnp.dot(
                    hs[l].astype(jnp.bfloat16), whh0_ref[...],
                    preferred_element_type=jnp.float32)
            else:
                # Fused [x_in ; h_prev] @ [W_ih ; W_hh]: K = 2H fills the MXU.
                # Inter-layer dropout: identity at eval time.
                hin = jnp.concatenate([h_below, hs[l]],
                                      axis=-1).astype(jnp.bfloat16)
                gates = (jnp.dot(hin, wcat_ref[l - 1],
                                 preferred_element_type=jnp.float32)
                         + biases[l - 1])
            # PyTorch gate order [i, f, g, o]; activations stay f32 (VPU/EUP).
            i_g = jax.nn.sigmoid(gates[:, 0 * H:1 * H])
            f_g = jax.nn.sigmoid(gates[:, 1 * H:2 * H])
            g_g = jnp.tanh(gates[:, 2 * H:3 * H])
            o_g = jax.nn.sigmoid(gates[:, 3 * H:4 * H])
            c_new = f_g * cs[l] + i_g * g_g
            h_new = o_g * jnp.tanh(c_new)
            new_cs.append(c_new)
            new_hs.append(h_new)
            h_below = h_new
        return tuple(new_hs), tuple(new_cs)

    hs, cs = jax.lax.fori_loop(0, Tc, one_step, (h0, c0), unroll=True)

    # Single state write-back per grid step.
    for l in range(L):
        h_sc[l] = hs[l]
        c_sc[l] = cs[l]

    # Final Linear + sigmoid head, fused; runs once on the last grid step.
    @pl.when(blk == pl.num_programs(0) - 1)
    def _():
        # h_n[-1] dropout: identity at eval time.
        logits = (jnp.dot(hs[L - 1], wfc_ref[...],
                          preferred_element_type=jnp.float32)
                  + bfc_ref[...])
        out_ref[...] = jax.nn.sigmoid(logits).astype(out_ref.dtype)


def _lstm_stack_fc(x_tm, wih0_t, whh0_t, w_cat, b0, b_rest, w_fc_t, b_fc, *,
                   num_layers, time_block):
    T, B, H = x_tm.shape
    L = num_layers
    Lr = w_cat.shape[0]
    out_dim = w_fc_t.shape[1]

    tb = min(time_block, T)
    while T % tb != 0:        # fall back to a divisor of T
        tb -= 1

    resident = lambda spec_shape, imap: pl.BlockSpec(  # noqa: E731
        spec_shape, imap, pipeline_mode=pl.Buffered(1))

    grid_spec = pltpu.PrefetchScalarGridSpec(
        num_scalar_prefetch=0,
        grid=(T // tb,),
        in_specs=[
            # streamed per-time-block embedded inputs (bf16)
            pl.BlockSpec((tb, B, H), lambda t: (t, 0, 0)),
            # resident weights / biases (constant index map, single-buffered)
            resident((H, 4 * H), lambda t: (0, 0)),
            resident((H, 4 * H), lambda t: (0, 0)),
            resident((Lr, 2 * H, 4 * H), lambda t: (0, 0, 0)),
            resident((1, 4 * H), lambda t: (0, 0)),
            resident((Lr, 1, 4 * H), lambda t: (0, 0, 0)),
            resident((H, out_dim), lambda t: (0, 0)),
            resident((1, out_dim), lambda t: (0, 0)),
        ],
        out_specs=pl.BlockSpec((B, out_dim), lambda t: (0, 0)),
        scratch_shapes=[
            pltpu.VMEM((L, B, H), jnp.float32),        # h state, all layers
            pltpu.VMEM((L, B, H), jnp.float32),        # c state, all layers
            pltpu.VMEM((tb, B, 4 * H), jnp.float32),   # layer-0 gates cache
        ],
    )
    return pl.pallas_call(
        _lstm_fused_kernel,
        out_shape=jax.ShapeDtypeStruct((B, out_dim), jnp.float32),
        grid_spec=grid_spec,
        compiler_params=pltpu.CompilerParams(
            dimension_semantics=("arbitrary",),        # time is a true recurrence
            vmem_limit_bytes=48 * 1024 * 1024),
    )(x_tm, wih0_t, whh0_t, w_cat, b0, b_rest, w_fc_t, b_fc)


# ----------------------------------------------------------------------------
# Full model forward (eval mode).
# ----------------------------------------------------------------------------
@functools.partial(jax.jit, static_argnames=("time_block",))
def lstm_net_forward(params, tokens, time_block=4):
    """tokens: (B, T) int32 indices -> (B * output_dim, 1) float32."""
    layers = params["lstm"]
    L = len(layers)
    H = params["embedding"].shape[1]

    # Embedding gather (XLA glue); stream inputs in bf16 (halves HBM traffic).
    x = jnp.take(params["embedding"], tokens, axis=0)        # (B, T, H)
    x = jnp.transpose(x, (1, 0, 2)).astype(jnp.bfloat16)     # (T, B, H)

    # Layer-0 weights (transposed, bf16 MXU operands); bias stays f32.
    wih0_t = jnp.transpose(layers[0]["w_ih"]).astype(jnp.bfloat16)   # (H, 4H)
    whh0_t = jnp.transpose(layers[0]["w_hh"]).astype(jnp.bfloat16)   # (H, 4H)
    b0 = (layers[0]["b_ih"] + layers[0]["b_hh"]).reshape(1, 4 * H)   # f32

    # Layers 1..L-1: fused [W_ih ; W_hh] (2H, 4H) per layer, bf16.
    if L > 1:
        w_cat = jnp.stack(
            [jnp.concatenate([jnp.transpose(layers[l]["w_ih"]),
                              jnp.transpose(layers[l]["w_hh"])], axis=0)
             for l in range(1, L)], axis=0).astype(jnp.bfloat16)     # (L-1,2H,4H)
        b_rest = jnp.stack(
            [(layers[l]["b_ih"] + layers[l]["b_hh"]).reshape(1, 4 * H)
             for l in range(1, L)], axis=0)                          # (L-1,1,4H)
    else:  # dummy arrays (never read inside the kernel when L == 1)
        w_cat = jnp.zeros((1, 2 * H, 4 * H), jnp.bfloat16)
        b_rest = jnp.zeros((1, 1, 4 * H), jnp.float32)

    # FC head stays f32: tiny and runs exactly once.
    w_fc_t = jnp.transpose(params["fc_w"])               # (H, out_dim)
    b_fc = params["fc_b"].reshape(1, -1)                 # (1, out_dim)

    out = _lstm_stack_fc(x, wih0_t, whh0_t, w_cat, b0, b_rest, w_fc_t, b_fc,
                         num_layers=L, time_block=time_block)   # (B, out_dim)
    return out.reshape(-1, 1)


# ----------------------------------------------------------------------------
# Pure-JAX reference (lax.scan) and parameter init.
# ----------------------------------------------------------------------------
def lstm_net_reference(params, tokens):
    x = jnp.take(params["embedding"], tokens, axis=0)    # (B, T, H)
    B, T, H = x.shape
    seq = jnp.transpose(x, (1, 0, 2))                    # (T, B, H)
    h_last = None
    for layer in params["lstm"]:
        w_ih, w_hh = layer["w_ih"], layer["w_hh"]
        b = layer["b_ih"] + layer["b_hh"]

        def step(carry, x_t, w_ih=w_ih, w_hh=w_hh, b=b):
            h_prev, c_prev = carry
            gates = x_t @ w_ih.T + h_prev @ w_hh.T + b
            i = jax.nn.sigmoid(gates[:, 0 * H:1 * H])
            f = jax.nn.sigmoid(gates[:, 1 * H:2 * H])
            g = jnp.tanh(gates[:, 2 * H:3 * H])
            o = jax.nn.sigmoid(gates[:, 3 * H:4 * H])
            c = f * c_prev + i * g
            h = o * jnp.tanh(c)
            return (h, c), h

        init = (jnp.zeros((B, H), jnp.float32), jnp.zeros((B, H), jnp.float32))
        (h_last, _), seq = jax.lax.scan(step, init, seq)
    logits = h_last @ params["fc_w"].T + params["fc_b"]
    return jax.nn.sigmoid(logits).reshape(-1, 1)


def init_params(key, input_dim, hidden_dim, output_dim, num_layers):
    ks = jax.random.split(key, 2 + 4 * num_layers)
    params = {}
    params["embedding"] = 0.1 * jax.random.normal(
        ks[0], (input_dim, hidden_dim), jnp.float32)
    lstm = []
    for l in range(num_layers):
        k0, k1, k2, k3 = ks[1 + 4 * l: 5 + 4 * l]
        lstm.append({
            "w_ih": 0.1 * jax.random.normal(k0, (4 * hidden_dim, hidden_dim), jnp.float32),
            "w_hh": 0.1 * jax.random.normal(k1, (4 * hidden_dim, hidden_dim), jnp.float32),
            "b_ih": 0.1 * jax.random.normal(k2, (4 * hidden_dim,), jnp.float32),
            "b_hh": 0.1 * jax.random.normal(k3, (4 * hidden_dim,), jnp.float32),
        })
    params["lstm"] = lstm
    params["fc_w"] = 0.1 * jax.random.normal(
        ks[-1], (output_dim, hidden_dim), jnp.float32)
    params["fc_b"] = jnp.zeros((output_dim,), jnp.float32)
    return params


if __name__ == "__main__":
    # Small, TPU-friendly sizes (H is a multiple of 128 -> lane-dense gates).
    input_dim = 16      # vocab size
    hidden_dim = 128
    output_dim = 1
    num_layers = 2
    batch = 8
    seq = 8

    key = jax.random.PRNGKey(0)
    pkey, xkey = jax.random.split(key)
    params = init_params(pkey, input_dim, hidden_dim, output_dim, num_layers)
    tokens = jax.random.randint(xkey, (batch, seq), 0, input_dim, dtype=jnp.int32)

    out = lstm_net_forward(params, tokens, time_block=4)   # grid=(2,)
    out = jax.block_until_ready(out)
    assert out.shape == (batch * output_dim, 1)

    ref = jax.block_until_ready(lstm_net_reference(params, tokens))
    # bf16 MXU operands (f32 accumulation) -> slightly looser tolerance vs f32 ref.
    np.testing.assert_allclose(np.asarray(out), np.asarray(ref),
                               rtol=2e-2, atol=2e-2)
    print("KERNEL_OK")
</pallas_src>

<mosaic_0001>
module attributes {stable_mosaic.version = 11 : i64} {
  func.func @_lstm_fused_kernel(%arg0: i32, %arg1: memref<4x8x128xbf16, #tpu.memory_space<vmem>>, %arg2: memref<128x512xbf16, #tpu.memory_space<vmem>>, %arg3: memref<128x512xbf16, #tpu.memory_space<vmem>>, %arg4: memref<1x256x512xbf16, #tpu.memory_space<vmem>>, %arg5: memref<1x512xf32, #tpu.memory_space<vmem>>, %arg6: memref<1x1x512xf32, #tpu.memory_space<vmem>>, %arg7: memref<128x1xf32, #tpu.memory_space<vmem>>, %arg8: memref<1x1xf32, #tpu.memory_space<vmem>>, %arg9: memref<8x1xf32, #tpu.memory_space<vmem>>, %arg10: memref<2x8x128xf32, #tpu.memory_space<vmem>>, %arg11: memref<2x8x128xf32, #tpu.memory_space<vmem>>, %arg12: memref<4x8x512xf32, #tpu.memory_space<vmem>>) attributes {dimension_semantics = [#tpu.dimension_semantics<arbitrary>], iteration_bounds = array<i64: 2>, scalar_prefetch = 0 : i64, scratch_operands = 3 : i64, tpu.core_type = #tpu.core_type<tc>, window_params = [{transform_indices = @transform_0, window_bounds = array<i64: 4, 8, 128>}, {pipeline_mode = #tpu.pipeline_mode<synchronous>, transform_indices = @transform_1, window_bounds = array<i64: 128, 512>}, {pipeline_mode = #tpu.pipeline_mode<synchronous>, transform_indices = @transform_2, window_bounds = array<i64: 128, 512>}, {pipeline_mode = #tpu.pipeline_mode<synchronous>, transform_indices = @transform_3, window_bounds = array<i64: 1, 256, 512>}, {pipeline_mode = #tpu.pipeline_mode<synchronous>, transform_indices = @transform_4, window_bounds = array<i64: 1, 512>}, {pipeline_mode = #tpu.pipeline_mode<synchronous>, transform_indices = @transform_5, window_bounds = array<i64: 1, 1, 512>}, {pipeline_mode = #tpu.pipeline_mode<synchronous>, transform_indices = @transform_6, window_bounds = array<i64: 128, 1>}, {pipeline_mode = #tpu.pipeline_mode<synchronous>, transform_indices = @transform_7, window_bounds = array<i64: 1, 1>}, {pipeline_mode = #tpu.pipeline_mode<synchronous>, transform_indices = @transform_8, window_bounds = array<i64: 8, 1>}]} {
    %c0_i32 = arith.constant 0 : i32
    %0 = arith.cmpi eq, %arg0, %c0_i32 : i32
    %1 = arith.extui %0 : i1 to i32
    %c0_i32_0 = arith.constant 0 : i32
    %2 = arith.cmpi ne, %1, %c0_i32_0 : i32
    scf.if %2 {
      %cst_99 = arith.constant 0.000000e+00 : f32
      %291 = vector.broadcast %cst_99 : f32 to vector<2x8x128xf32>
      %c0_100 = arith.constant 0 : index
      %c0_101 = arith.constant 0 : index
      %c0_102 = arith.constant 0 : index
      %292 = vector.load %arg10[%c0_100, %c0_101, %c0_102] : memref<2x8x128xf32, #tpu.memory_space<vmem>>, vector<2x8x128xf32>
      tpu.vector_store %arg10[%c0_100, %c0_101, %c0_102], %291 {strides = array<i32>} : memref<2x8x128xf32, #tpu.memory_space<vmem>>, vector<2x8x128xf32>,
      %cst_103 = arith.constant 0.000000e+00 : f32
      %293 = vector.broadcast %cst_103 : f32 to vector<2x8x128xf32>
      %c0_104 = arith.constant 0 : index
      %c0_105 = arith.constant 0 : index
      %c0_106 = arith.constant 0 : index
      %294 = vector.load %arg11[%c0_104, %c0_105, %c0_106] : memref<2x8x128xf32, #tpu.memory_space<vmem>>, vector<2x8x128xf32>
      tpu.vector_store %arg11[%c0_104, %c0_105, %c0_106], %293 {strides = array<i32>} : memref<2x8x128xf32, #tpu.memory_space<vmem>>, vector<2x8x128xf32>,
    } else {
    }
    %c0 = arith.constant 0 : index
    %c0_1 = arith.constant 0 : index
    %c0_2 = arith.constant 0 : index
    %3 = vector.load %arg1[%c0, %c0_1, %c0_2] : memref<4x8x128xbf16, #tpu.memory_space<vmem>>, vector<4x8x128xbf16>
    %4 = vector.shape_cast %3 : vector<4x8x128xbf16> to vector<32x128xbf16>
    %c0_3 = arith.constant 0 : index
    %c0_4 = arith.constant 0 : index
    %5 = vector.load %arg2[%c0_3, %c0_4] : memref<128x512xbf16, #tpu.memory_space<vmem>>, vector<128x512xbf16>
    %cst = arith.constant dense<0.000000e+00> : vector<32x512xf32>
    %6 = tpu.matmul %4, %5, %cst {dimension_numbers = #tpu.dot_dimension_numbers<[1], [0], [0], [1], [0, 0, 1, 1], [], []>} : vector<32x128xbf16>, vector<128x512xbf16>, vector<32x512xf32> -> vector<32x512xf32>
    %c0_5 = arith.constant 0 : index
    %c0_6 = arith.constant 0 : index
    %7 = vector.load %arg5[%c0_5, %c0_6] : memref<1x512xf32, #tpu.memory_space<vmem>>, vector<1x512xf32>
    %8 = vector.broadcast %7 : vector<1x512xf32> to vector<32x512xf32>
    %9 = arith.addf %6, %8 : vector<32x512xf32>
    %10 = vector.shape_cast %9 : vector<32x512xf32> to vector<4x8x512xf32>
    %c0_7 = arith.constant 0 : index
    %c0_8 = arith.constant 0 : index
    %c0_9 = arith.constant 0 : index
    %11 = vector.load %arg12[%c0_7, %c0_8, %c0_9] : memref<4x8x512xf32, #tpu.memory_space<vmem>>, vector<4x8x512xf32>
    tpu.vector_store %arg12[%c0_7, %c0_8, %c0_9], %10 {strides = array<i32>} : memref<4x8x512xf32, #tpu.memory_space<vmem>>, vector<4x8x512xf32>,
    %c0_10 = arith.constant 0 : index
    %c0_11 = arith.constant 0 : index
    %c0_12 = arith.constant 0 : index
    %12 = vector.load %arg6[%c0_10, %c0_11, %c0_12] : memref<1x1x512xf32, #tpu.memory_space<vmem>>, vector<1x1x512xf32>
    %13 = vector.shape_cast %12 : vector<1x1x512xf32> to vector<1x512xf32>
    %14 = vector.shape_cast %13 : vector<1x512xf32> to vector<1x512xf32>
    %15 = vector.broadcast %14 : vector<1x512xf32> to vector<8x512xf32>
    %c0_13 = arith.constant 0 : index
    %c0_14 = arith.constant 0 : index
    %c0_15 = arith.constant 0 : index
    %16 = vector.load %arg10[%c0_13, %c0_14, %c0_15] : memref<2x8x128xf32, #tpu.memory_space<vmem>>, vector<1x8x128xf32>
    %17 = vector.shape_cast %16 : vector<1x8x128xf32> to vector<8x128xf32>
    %c1 = arith.constant 1 : index
    %c0_16 = arith.constant 0 : index
    %c0_17 = arith.constant 0 : index
    %18 = vector.load %arg10[%c1, %c0_16, %c0_17] : memref<2x8x128xf32, #tpu.memory_space<vmem>>, vector<1x8x128xf32>
    %19 = vector.shape_cast %18 : vector<1x8x128xf32> to vector<8x128xf32>
    %c0_18 = arith.constant 0 : index
    %c0_19 = arith.constant 0 : index
    %c0_20 = arith.constant 0 : index
    %20 = vector.load %arg11[%c0_18, %c0_19, %c0_20] : memref<2x8x128xf32, #tpu.memory_space<vmem>>, vector<1x8x128xf32>
    %21 = vector.shape_cast %20 : vector<1x8x128xf32> to vector<8x128xf32>
    %c1_21 = arith.constant 1 : index
    %c0_22 = arith.constant 0 : index
    %c0_23 = arith.constant 0 : index
    %22 = vector.load %arg11[%c1_21, %c0_22, %c0_23] : memref<2x8x128xf32, #tpu.memory_space<vmem>>, vector<1x8x128xf32>
    %23 = vector.shape_cast %22 : vector<1x8x128xf32> to vector<8x128xf32>
    %c0_i32_24 = arith.constant 0 : i32
    %24 = arith.index_cast %c0_i32_24 : i32 to index
    %c0_25 = arith.constant 0 : index
    %c0_26 = arith.constant 0 : index
    %25 = vector.load %arg12[%24, %c0_25, %c0_26] : memref<4x8x512xf32, #tpu.memory_space<vmem>>, vector<1x8x512xf32>
    %26 = vector.shape_cast %25 : vector<1x8x512xf32> to vector<8x512xf32>
    %27 = arith.truncf %17 : vector<8x128xf32> to vector<8x128xbf16>
    %c0_27 = arith.constant 0 : index
    %c0_28 = arith.constant 0 : index
    %28 = vector.load %arg3[%c0_27, %c0_28] : memref<128x512xbf16, #tpu.memory_space<vmem>>, vector<128x512xbf16>
    %cst_29 = arith.constant dense<0.000000e+00> : vector<8x512xf32>
    %29 = tpu.matmul %27, %28, %cst_29 {dimension_numbers = #tpu.dot_dimension_numbers<[1], [0], [0], [1], [0, 0, 1, 1], [], []>} : vector<8x128xbf16>, vector<128x512xbf16>, vector<8x512xf32> -> vector<8x512xf32>
    %30 = arith.addf %26, %29 : vector<8x512xf32>
    %31 = vector.extract_strided_slice %30 {offsets = [0, 0], sizes = [8, 128], strides = [1, 1]} : vector<8x512xf32> to vector<8x128xf32>
    %32 = arith.negf %31 : vector<8x128xf32>
    %33 = math.exp %32 : vector<8x128xf32>
    %cst_30 = arith.constant 1.000000e+00 : f32
    %34 = vector.broadcast %cst_30 : f32 to vector<8x128xf32>
    %35 = arith.addf %34, %33 : vector<8x128xf32>
    %36 = arith.divf %34, %35 : vector<8x128xf32>
    %37 = vector.extract_strided_slice %30 {offsets = [0, 128], sizes = [8, 128], strides = [1, 1]} : vector<8x512xf32> to vector<8x128xf32>
    %38 = arith.negf %37 : vector<8x128xf32>
    %39 = math.exp %38 : vector<8x128xf32>
    %cst_31 = arith.constant 1.000000e+00 : f32
    %40 = vector.broadcast %cst_31 : f32 to vector<8x128xf32>
    %41 = arith.addf %40, %39 : vector<8x128xf32>
    %42 = arith.divf %40, %41 : vector<8x128xf32>
    %43 = vector.extract_strided_slice %30 {offsets = [0, 256], sizes = [8, 128], strides = [1, 1]} : vector<8x512xf32> to vector<8x128xf32>
    %44 = math.tanh %43 : vector<8x128xf32>
    %45 = vector.extract_strided_slice %30 {offsets = [0, 384], sizes = [8, 128], strides = [1, 1]} : vector<8x512xf32> to vector<8x128xf32>
    %46 = arith.negf %45 : vector<8x128xf32>
    %47 = math.exp %46 : vector<8x128xf32>
    %cst_32 = arith.constant 1.000000e+00 : f32
    %48 = vector.broadcast %cst_32 : f32 to vector<8x128xf32>
    %49 = arith.addf %48, %47 : vector<8x128xf32>
    %50 = arith.divf %48, %49 : vector<8x128xf32>
    %51 = arith.mulf %42, %21 : vector<8x128xf32>
    %52 = arith.mulf %36, %44 : vector<8x128xf32>
    %53 = arith.addf %51, %52 : vector<8x128xf32>
    %54 = math.tanh %53 : vector<8x128xf32>
    %55 = arith.mulf %50, %54 : vector<8x128xf32>
    %56 = tpu.concatenate %55, %19 in 1 : vector<8x128xf32>, vector<8x128xf32> -> vector<8x256xf32>
    %57 = arith.truncf %56 : vector<8x256xf32> to vector<8x256xbf16>
    %c0_33 = arith.constant 0 : index
    %c0_34 = arith.constant 0 : index
    %c0_35 = arith.constant 0 : index
    %58 = vector.load %arg4[%c0_33, %c0_34, %c0_35] : memref<1x256x512xbf16, #tpu.memory_space<vmem>>, vector<1x256x512xbf16>
    %59 = vector.shape_cast %58 : vector<1x256x512xbf16> to vector<256x512xbf16>
    %cst_36 = arith.constant dense<0.000000e+00> : vector<8x512xf32>
    %60 = tpu.matmul %57, %59, %cst_36 {dimension_numbers = #tpu.dot_dimension_numbers<[1], [0], [0], [1], [0, 0, 1, 1], [], []>} : vector<8x256xbf16>, vector<256x512xbf16>, vector<8x512xf32> -> vector<8x512xf32>
    %61 = arith.addf %60, %15 : vector<8x512xf32>
    %62 = vector.extract_strided_slice %61 {offsets = [0, 0], sizes = [8, 128], strides = [1, 1]} : vector<8x512xf32> to vector<8x128xf32>
    %63 = arith.negf %62 : vector<8x128xf32>
    %64 = math.exp %63 : vector<8x128xf32>
    %cst_37 = arith.constant 1.000000e+00 : f32
    %65 = vector.broadcast %cst_37 : f32 to vector<8x128xf32>
    %66 = arith.addf %65, %64 : vector<8x128xf32>
    %67 = arith.divf %65, %66 : vector<8x128xf32>
    %68 = vector.extract_strided_slice %61 {offsets = [0, 128], sizes = [8, 128], strides = [1, 1]} : vector<8x512xf32> to vector<8x128xf32>
    %69 = arith.negf %68 : vector<8x128xf32>
    %70 = math.exp %69 : vector<8x128xf32>
    %cst_38 = arith.constant 1.000000e+00 : f32
    %71 = vector.broadcast %cst_38 : f32 to vector<8x128xf32>
    %72 = arith.addf %71, %70 : vector<8x128xf32>
    %73 = arith.divf %71, %72 : vector<8x128xf32>
    %74 = vector.extract_strided_slice %61 {offsets = [0, 256], sizes = [8, 128], strides = [1, 1]} : vector<8x512xf32> to vector<8x128xf32>
    %75 = math.tanh %74 : vector<8x128xf32>
    %76 = vector.extract_strided_slice %61 {offsets = [0, 384], sizes = [8, 128], strides = [1, 1]} : vector<8x512xf32> to vector<8x128xf32>
    %77 = arith.negf %76 : vector<8x128xf32>
    %78 = math.exp %77 : vector<8x128xf32>
    %cst_39 = arith.constant 1.000000e+00 : f32
    %79 = vector.broadcast %cst_39 : f32 to vector<8x128xf32>
    %80 = arith.addf %79, %78 : vector<8x128xf32>
    %81 = arith.divf %79, %80 : vector<8x128xf32>
    %82 = arith.mulf %73, %23 : vector<8x128xf32>
    %83 = arith.mulf %67, %75 : vector<8x128xf32>
    %84 = arith.addf %82, %83 : vector<8x128xf32>
    %85 = math.tanh %84 : vector<8x128xf32>
    %86 = arith.mulf %81, %85 : vector<8x128xf32>
    %c1_i32 = arith.constant 1 : i32
    %87 = arith.index_cast %c1_i32 : i32 to index
    %c0_40 = arith.constant 0 : index
    %c0_41 = arith.constant 0 : index
    %88 = vector.load %arg12[%87, %c0_40, %c0_41] : memref<4x8x512xf32, #tpu.memory_space<vmem>>, vector<1x8x512xf32>
    %89 = vector.shape_cast %88 : vector<1x8x512xf32> to vector<8x512xf32>
    %90 = arith.truncf %55 : vector<8x128xf32> to vector<8x128xbf16>
    %c0_42 = arith.constant 0 : index
    %c0_43 = arith.constant 0 : index
    %91 = vector.load %arg3[%c0_42, %c0_43] : memref<128x512xbf16, #tpu.memory_space<vmem>>, vector<128x512xbf16>
    %cst_44 = arith.constant dense<0.000000e+00> : vector<8x512xf32>
    %92 = tpu.matmul %90, %91, %cst_44 {dimension_numbers = #tpu.dot_dimension_numbers<[1], [0], [0], [1], [0, 0, 1, 1], [], []>} : vector<8x128xbf16>, vector<128x512xbf16>, vector<8x512xf32> -> vector<8x512xf32>
    %93 = arith.addf %89, %92 : vector<8x512xf32>
    %94 = vector.extract_strided_slice %93 {offsets = [0, 0], sizes = [8, 128], strides = [1, 1]} : vector<8x512xf32> to vector<8x128xf32>
    %95 = arith.negf %94 : vector<8x128xf32>
    %96 = math.exp %95 : vector<8x128xf32>
    %cst_45 = arith.constant 1.000000e+00 : f32
    %97 = vector.broadcast %cst_45 : f32 to vector<8x128xf32>
    %98 = arith.addf %97, %96 : vector<8x128xf32>
    %99 = arith.divf %97, %98 : vector<8x128xf32>
    %100 = vector.extract_strided_slice %93 {offsets = [0, 128], sizes = [8, 128], strides = [1, 1]} : vector<8x512xf32> to vector<8x128xf32>
    %101 = arith.negf %100 : vector<8x128xf32>
    %102 = math.exp %101 : vector<8x128xf32>
    %cst_46 = arith.constant 1.000000e+00 : f32
    %103 = vector.broadcast %cst_46 : f32 to vector<8x128xf32>
    %104 = arith.addf %103, %102 : vector<8x128xf32>
    %105 = arith.divf %103, %104 : vector<8x128xf32>
    %106 = vector.extract_strided_slice %93 {offsets = [0, 256], sizes = [8, 128], strides = [1, 1]} : vector<8x512xf32> to vector<8x128xf32>
    %107 = math.tanh %106 : vector<8x128xf32>
    %108 = vector.extract_strided_slice %93 {offsets = [0, 384], sizes = [8, 128], strides = [1, 1]} : vector<8x512xf32> to vector<8x128xf32>
    %109 = arith.negf %108 : vector<8x128xf32>
    %110 = math.exp %109 : vector<8x128xf32>
    %cst_47 = arith.constant 1.000000e+00 : f32
    %111 = vector.broadcast %cst_47 : f32 to vector<8x128xf32>
    %112 = arith.addf %111, %110 : vector<8x128xf32>
    %113 = arith.divf %111, %112 : vector<8x128xf32>
    %114 = arith.mulf %105, %53 : vector<8x128xf32>
    %115 = arith.mulf %99, %107 : vector<8x128xf32>
    %116 = arith.addf %114, %115 : vector<8x128xf32>
    %117 = math.tanh %116 : vector<8x128xf32>
    %118 = arith.mulf %113, %117 : vector<8x128xf32>
    %119 = tpu.concatenate %118, %86 in 1 : vector<8x128xf32>, vector<8x128xf32> -> vector<8x256xf32>
    %120 = arith.truncf %119 : vector<8x256xf32> to vector<8x256xbf16>
    %c0_48 = arith.constant 0 : index
    %c0_49 = arith.constant 0 : index
    %c0_50 = arith.constant 0 : index
    %121 = vector.load %arg4[%c0_48, %c0_49, %c0_50] : memref<1x256x512xbf16, #tpu.memory_space<vmem>>, vector<1x256x512xbf16>
    %122 = vector.shape_cast %121 : vector<1x256x512xbf16> to vector<256x512xbf16>
    %cst_51 = arith.constant dense<0.000000e+00> : vector<8x512xf32>
    %123 = tpu.matmul %120, %122, %cst_51 {dimension_numbers = #tpu.dot_dimension_numbers<[1], [0], [0], [1], [0, 0, 1, 1], [], []>} : vector<8x256xbf16>, vector<256x512xbf16>, vector<8x512xf32> -> vector<8x512xf32>
    %124 = arith.addf %123, %15 : vector<8x512xf32>
    %125 = vector.extract_strided_slice %124 {offsets = [0, 0], sizes = [8, 128], strides = [1, 1]} : vector<8x512xf32> to vector<8x128xf32>
    %126 = arith.negf %125 : vector<8x128xf32>
    %127 = math.exp %126 : vector<8x128xf32>
    %cst_52 = arith.constant 1.000000e+00 : f32
    %128 = vector.broadcast %cst_52 : f32 to vector<8x128xf32>
    %129 = arith.addf %128, %127 : vector<8x128xf32>
    %130 = arith.divf %128, %129 : vector<8x128xf32>
    %131 = vector.extract_strided_slice %124 {offsets = [0, 128], sizes = [8, 128], strides = [1, 1]} : vector<8x512xf32> to vector<8x128xf32>
    %132 = arith.negf %131 : vector<8x128xf32>
    %133 = math.exp %132 : vector<8x128xf32>
    %cst_53 = arith.constant 1.000000e+00 : f32
    %134 = vector.broadcast %cst_53 : f32 to vector<8x128xf32>
    %135 = arith.addf %134, %133 : vector<8x128xf32>
    %136 = arith.divf %134, %135 : vector<8x128xf32>
    %137 = vector.extract_strided_slice %124 {offsets = [0, 256], sizes = [8, 128], strides = [1, 1]} : vector<8x512xf32> to vector<8x128xf32>
    %138 = math.tanh %137 : vector<8x128xf32>
    %139 = vector.extract_strided_slice %124 {offsets = [0, 384], sizes = [8, 128], strides = [1, 1]} : vector<8x512xf32> to vector<8x128xf32>
    %140 = arith.negf %139 : vector<8x128xf32>
    %141 = math.exp %140 : vector<8x128xf32>
    %cst_54 = arith.constant 1.000000e+00 : f32
    %142 = vector.broadcast %cst_54 : f32 to vector<8x128xf32>
    %143 = arith.addf %142, %141 : vector<8x128xf32>
    %144 = arith.divf %142, %143 : vector<8x128xf32>
    %145 = arith.mulf %136, %84 : vector<8x128xf32>
    %146 = arith.mulf %130, %138 : vector<8x128xf32>
    %147 = arith.addf %145, %146 : vector<8x128xf32>
    %148 = math.tanh %147 : vector<8x128xf32>
    %149 = arith.mulf %144, %148 : vector<8x128xf32>
    %c2_i32 = arith.constant 2 : i32
    %150 = arith.index_cast %c2_i32 : i32 to index
    %c0_55 = arith.constant 0 : index
    %c0_56 = arith.constant 0 : index
    %151 = vector.load %arg12[%150, %c0_55, %c0_56] : memref<4x8x512xf32, #tpu.memory_space<vmem>>, vector<1x8x512xf32>
    %152 = vector.shape_cast %151 : vector<1x8x512xf32> to vector<8x512xf32>
    %153 = arith.truncf %118 : vector<8x128xf32> to vector<8x128xbf16>
    %c0_57 = arith.constant 0 : index
    %c0_58 = arith.constant 0 : index
    %154 = vector.load %arg3[%c0_57, %c0_58] : memref<128x512xbf16, #tpu.memory_space<vmem>>, vector<128x512xbf16>
    %cst_59 = arith.constant dense<0.000000e+00> : vector<8x512xf32>
    %155 = tpu.matmul %153, %154, %cst_59 {dimension_numbers = #tpu.dot_dimension_numbers<[1], [0], [0], [1], [0, 0, 1, 1], [], []>} : vector<8x128xbf16>, vector<128x512xbf16>, vector<8x512xf32> -> vector<8x512xf32>
    %156 = arith.addf %152, %155 : vector<8x512xf32>
    %157 = vector.extract_strided_slice %156 {offsets = [0, 0], sizes = [8, 128], strides = [1, 1]} : vector<8x512xf32> to vector<8x128xf32>
    %158 = arith.negf %157 : vector<8x128xf32>
    %159 = math.exp %158 : vector<8x128xf32>
    %cst_60 = arith.constant 1.000000e+00 : f32
    %160 = vector.broadcast %cst_60 : f32 to vector<8x128xf32>
    %161 = arith.addf %160, %159 : vector<8x128xf32>
    %162 = arith.divf %160, %161 : vector<8x128xf32>
    %163 = vector.extract_strided_slice %156 {offsets = [0, 128], sizes = [8, 128], strides = [1, 1]} : vector<8x512xf32> to vector<8x128xf32>
    %164 = arith.negf %163 : vector<8x128xf32>
    %165 = math.exp %164 : vector<8x128xf32>
    %cst_61 = arith.constant 1.000000e+00 : f32
    %166 = vector.broadcast %cst_61 : f32 to vector<8x128xf32>
    %167 = arith.addf %166, %165 : vector<8x128xf32>
    %168 = arith.divf %166, %167 : vector<8x128xf32>
    %169 = vector.extract_strided_slice %156 {offsets = [0, 256], sizes = [8, 128], strides = [1, 1]} : vector<8x512xf32> to vector<8x128xf32>
    %170 = math.tanh %169 : vector<8x128xf32>
    %171 = vector.extract_strided_slice %156 {offsets = [0, 384], sizes = [8, 128], strides = [1, 1]} : vector<8x512xf32> to vector<8x128xf32>
    %172 = arith.negf %171 : vector<8x128xf32>
    %173 = math.exp %172 : vector<8x128xf32>
    %cst_62 = arith.constant 1.000000e+00 : f32
    %174 = vector.broadcast %cst_62 : f32 to vector<8x128xf32>
    %175 = arith.addf %174, %173 : vector<8x128xf32>
    %176 = arith.divf %174, %175 : vector<8x128xf32>
    %177 = arith.mulf %168, %116 : vector<8x128xf32>
    %178 = arith.mulf %162, %170 : vector<8x128xf32>
    %179 = arith.addf %177, %178 : vector<8x128xf32>
    %180 = math.tanh %179 : vector<8x128xf32>
    %181 = arith.mulf %176, %180 : vector<8x128xf32>
    %182 = tpu.concatenate %181, %149 in 1 : vector<8x128xf32>, vector<8x128xf32> -> vector<8x256xf32>
    %183 = arith.truncf %182 : vector<8x256xf32> to vector<8x256xbf16>
    %c0_63 = arith.constant 0 : index
    %c0_64 = arith.constant 0 : index
    %c0_65 = arith.constant 0 : index
    %184 = vector.load %arg4[%c0_63, %c0_64, %c0_65] : memref<1x256x512xbf16, #tpu.memory_space<vmem>>, vector<1x256x512xbf16>
    %185 = vector.shape_cast %184 : vector<1x256x512xbf16> to vector<256x512xbf16>
    %cst_66 = arith.constant dense<0.000000e+00> : vector<8x512xf32>
    %186 = tpu.matmul %183, %185, %cst_66 {dimension_numbers = #tpu.dot_dimension_numbers<[1], [0], [0], [1], [0, 0, 1, 1], [], []>} : vector<8x256xbf16>, vector<256x512xbf16>, vector<8x512xf32> -> vector<8x512xf32>
    %187 = arith.addf %186, %15 : vector<8x512xf32>
    %188 = vector.extract_strided_slice %187 {offsets = [0, 0], sizes = [8, 128], strides = [1, 1]} : vector<8x512xf32> to vector<8x128xf32>
    %189 = arith.negf %188 : vector<8x128xf32>
    %190 = math.exp %189 : vector<8x128xf32>
    %cst_67 = arith.constant 1.000000e+00 : f32
    %191 = vector.broadcast %cst_67 : f32 to vector<8x128xf32>
    %192 = arith.addf %191, %190 : vector<8x128xf32>
    %193 = arith.divf %191, %192 : vector<8x128xf32>
    %194 = vector.extract_strided_slice %187 {offsets = [0, 128], sizes = [8, 128], strides = [1, 1]} : vector<8x512xf32> to vector<8x128xf32>
    %195 = arith.negf %194 : vector<8x128xf32>
    %196 = math.exp %195 : vector<8x128xf32>
    %cst_68 = arith.constant 1.000000e+00 : f32
    %197 = vector.broadcast %cst_68 : f32 to vector<8x128xf32>
    %198 = arith.addf %197, %196 : vector<8x128xf32>
    %199 = arith.divf %197, %198 : vector<8x128xf32>
    %200 = vector.extract_strided_slice %187 {offsets = [0, 256], sizes = [8, 128], strides = [1, 1]} : vector<8x512xf32> to vector<8x128xf32>
    %201 = math.tanh %200 : vector<8x128xf32>
    %202 = vector.extract_strided_slice %187 {offsets = [0, 384], sizes = [8, 128], strides = [1, 1]} : vector<8x512xf32> to vector<8x128xf32>
    %203 = arith.negf %202 : vector<8x128xf32>
    %204 = math.exp %203 : vector<8x128xf32>
    %cst_69 = arith.constant 1.000000e+00 : f32
    %205 = vector.broadcast %cst_69 : f32 to vector<8x128xf32>
    %206 = arith.addf %205, %204 : vector<8x128xf32>
    %207 = arith.divf %205, %206 : vector<8x128xf32>
    %208 = arith.mulf %199, %147 : vector<8x128xf32>
    %209 = arith.mulf %193, %201 : vector<8x128xf32>
    %210 = arith.addf %208, %209 : vector<8x128xf32>
    %211 = math.tanh %210 : vector<8x128xf32>
    %212 = arith.mulf %207, %211 : vector<8x128xf32>
    %c3_i32 = arith.constant 3 : i32
    %213 = arith.index_cast %c3_i32 : i32 to index
    %c0_70 = arith.constant 0 : index
    %c0_71 = arith.constant 0 : index
    %214 = vector.load %arg12[%213, %c0_70, %c0_71] : memref<4x8x512xf32, #tpu.memory_space<vmem>>, vector<1x8x512xf32>
    %215 = vector.shape_cast %214 : vector<1x8x512xf32> to vector<8x512xf32>
    %216 = arith.truncf %181 : vector<8x128xf32> to vector<8x128xbf16>
    %c0_72 = arith.constant 0 : index
    %c0_73 = arith.constant 0 : index
    %217 = vector.load %arg3[%c0_72, %c0_73] : memref<128x512xbf16, #tpu.memory_space<vmem>>, vector<128x512xbf16>
    %cst_74 = arith.constant dense<0.000000e+00> : vector<8x512xf32>
    %218 = tpu.matmul %216, %217, %cst_74 {dimension_numbers = #tpu.dot_dimension_numbers<[1], [0], [0], [1], [0, 0, 1, 1], [], []>} : vector<8x128xbf16>, vector<128x512xbf16>, vector<8x512xf32> -> vector<8x512xf32>
    %219 = arith.addf %215, %218 : vector<8x512xf32>
    %220 = vector.extract_strided_slice %219 {offsets = [0, 0], sizes = [8, 128], strides = [1, 1]} : vector<8x512xf32> to vector<8x128xf32>
    %221 = arith.negf %220 : vector<8x128xf32>
    %222 = math.exp %221 : vector<8x128xf32>
    %cst_75 = arith.constant 1.000000e+00 : f32
    %223 = vector.broadcast %cst_75 : f32 to vector<8x128xf32>
    %224 = arith.addf %223, %222 : vector<8x128xf32>
    %225 = arith.divf %223, %224 : vector<8x128xf32>
    %226 = vector.extract_strided_slice %219 {offsets = [0, 128], sizes = [8, 128], strides = [1, 1]} : vector<8x512xf32> to vector<8x128xf32>
    %227 = arith.negf %226 : vector<8x128xf32>
    %228 = math.exp %227 : vector<8x128xf32>
    %cst_76 = arith.constant 1.000000e+00 : f32
    %229 = vector.broadcast %cst_76 : f32 to vector<8x128xf32>
    %230 = arith.addf %229, %228 : vector<8x128xf32>
    %231 = arith.divf %229, %230 : vector<8x128xf32>
    %232 = vector.extract_strided_slice %219 {offsets = [0, 256], sizes = [8, 128], strides = [1, 1]} : vector<8x512xf32> to vector<8x128xf32>
    %233 = math.tanh %232 : vector<8x128xf32>
    %234 = vector.extract_strided_slice %219 {offsets = [0, 384], sizes = [8, 128], strides = [1, 1]} : vector<8x512xf32> to vector<8x128xf32>
    %235 = arith.negf %234 : vector<8x128xf32>
    %236 = math.exp %235 : vector<8x128xf32>
    %cst_77 = arith.constant 1.000000e+00 : f32
    %237 = vector.broadcast %cst_77 : f32 to vector<8x128xf32>
    %238 = arith.addf %237, %236 : vector<8x128xf32>
    %239 = arith.divf %237, %238 : vector<8x128xf32>
    %240 = arith.mulf %231, %179 : vector<8x128xf32>
    %241 = arith.mulf %225, %233 : vector<8x128xf32>
    %242 = arith.addf %240, %241 : vector<8x128xf32>
    %243 = math.tanh %242 : vector<8x128xf32>
    %244 = arith.mulf %239, %243 : vector<8x128xf32>
    %245 = tpu.concatenate %244, %212 in 1 : vector<8x128xf32>, vector<8x128xf32> -> vector<8x256xf32>
    %246 = arith.truncf %245 : vector<8x256xf32> to vector<8x256xbf16>
    %c0_78 = arith.constant 0 : index
    %c0_79 = arith.constant 0 : index
    %c0_80 = arith.constant 0 : index
    %247 = vector.load %arg4[%c0_78, %c0_79, %c0_80] : memref<1x256x512xbf16, #tpu.memory_space<vmem>>, vector<1x256x512xbf16>
    %248 = vector.shape_cast %247 : vector<1x256x512xbf16> to vector<256x512xbf16>
    %cst_81 = arith.constant dense<0.000000e+00> : vector<8x512xf32>
    %249 = tpu.matmul %246, %248, %cst_81 {dimension_numbers = #tpu.dot_dimension_numbers<[1], [0], [0], [1], [0, 0, 1, 1], [], []>} : vector<8x256xbf16>, vector<256x512xbf16>, vector<8x512xf32> -> vector<8x512xf32>
    %250 = arith.addf %249, %15 : vector<8x512xf32>
    %251 = vector.extract_strided_slice %250 {offsets = [0, 0], sizes = [8, 128], strides = [1, 1]} : vector<8x512xf32> to vector<8x128xf32>
    %252 = arith.negf %251 : vector<8x128xf32>
    %253 = math.exp %252 : vector<8x128xf32>
    %cst_82 = arith.constant 1.000000e+00 : f32
    %254 = vector.broadcast %cst_82 : f32 to vector<8x128xf32>
    %255 = arith.addf %254, %253 : vector<8x128xf32>
    %256 = arith.divf %254, %255 : vector<8x128xf32>
    %257 = vector.extract_strided_slice %250 {offsets = [0, 128], sizes = [8, 128], strides = [1, 1]} : vector<8x512xf32> to vector<8x128xf32>
    %258 = arith.negf %257 : vector<8x128xf32>
    %259 = math.exp %258 : vector<8x128xf32>
    %cst_83 = arith.constant 1.000000e+00 : f32
    %260 = vector.broadcast %cst_83 : f32 to vector<8x128xf32>
    %261 = arith.addf %260, %259 : vector<8x128xf32>
    %262 = arith.divf %260, %261 : vector<8x128xf32>
    %263 = vector.extract_strided_slice %250 {offsets = [0, 256], sizes = [8, 128], strides = [1, 1]} : vector<8x512xf32> to vector<8x128xf32>
    %264 = math.tanh %263 : vector<8x128xf32>
    %265 = vector.extract_strided_slice %250 {offsets = [0, 384], sizes = [8, 128], strides = [1, 1]} : vector<8x512xf32> to vector<8x128xf32>
    %266 = arith.negf %265 : vector<8x128xf32>
    %267 = math.exp %266 : vector<8x128xf32>
    %cst_84 = arith.constant 1.000000e+00 : f32
    %268 = vector.broadcast %cst_84 : f32 to vector<8x128xf32>
    %269 = arith.addf %268, %267 : vector<8x128xf32>
    %270 = arith.divf %268, %269 : vector<8x128xf32>
    %271 = arith.mulf %262, %210 : vector<8x128xf32>
    %272 = arith.mulf %256, %264 : vector<8x128xf32>
    %273 = arith.addf %271, %272 : vector<8x128xf32>
    %274 = math.tanh %273 : vector<8x128xf32>
    %275 = arith.mulf %270, %274 : vector<8x128xf32>
    %c4_i32 = arith.constant 4 : i32
    %c0_85 = arith.constant 0 : index
    %c0_86 = arith.constant 0 : index
    %c0_87 = arith.constant 0 : index
    %276 = vector.load %arg10[%c0_85, %c0_86, %c0_87] : memref<2x8x128xf32, #tpu.memory_space<vmem>>, vector<1x8x128xf32>
    %277 = vector.shape_cast %276 : vector<1x8x128xf32> to vector<8x128xf32>
    %278 = vector.shape_cast %244 : vector<8x128xf32> to vector<1x8x128xf32>
    tpu.vector_store %arg10[%c0_85, %c0_86, %c0_87], %278 {strides = array<i32>} : memref<2x8x128xf32, #tpu.memory_space<vmem>>, vector<1x8x128xf32>,
    %c0_88 = arith.constant 0 : index
    %c0_89 = arith.constant 0 : index
    %c0_90 = arith.constant 0 : index
    %279 = vector.load %arg11[%c0_88, %c0_89, %c0_90] : memref<2x8x128xf32, #tpu.memory_space<vmem>>, vector<1x8x128xf32>
    %280 = vector.shape_cast %279 : vector<1x8x128xf32> to vector<8x128xf32>
    %281 = vector.shape_cast %242 : vector<8x128xf32> to vector<1x8x128xf32>
    tpu.vector_store %arg11[%c0_88, %c0_89, %c0_90], %281 {strides = array<i32>} : memref<2x8x128xf32, #tpu.memory_space<vmem>>, vector<1x8x128xf32>,
    %c1_91 = arith.constant 1 : index
    %c0_92 = arith.constant 0 : index
    %c0_93 = arith.constant 0 : index
    %282 = vector.load %arg10[%c1_91, %c0_92, %c0_93] : memref<2x8x128xf32, #tpu.memory_space<vmem>>, vector<1x8x128xf32>
    %283 = vector.shape_cast %282 : vector<1x8x128xf32> to vector<8x128xf32>
    %284 = vector.shape_cast %275 : vector<8x128xf32> to vector<1x8x128xf32>
    tpu.vector_store %arg10[%c1_91, %c0_92, %c0_93], %284 {strides = array<i32>} : memref<2x8x128xf32, #tpu.memory_space<vmem>>, vector<1x8x128xf32>,
    %c1_94 = arith.constant 1 : index
    %c0_95 = arith.constant 0 : index
    %c0_96 = arith.constant 0 : index
    %285 = vector.load %arg11[%c1_94, %c0_95, %c0_96] : memref<2x8x128xf32, #tpu.memory_space<vmem>>, vector<1x8x128xf32>
    %286 = vector.shape_cast %285 : vector<1x8x128xf32> to vector<8x128xf32>
    %287 = vector.shape_cast %273 : vector<8x128xf32> to vector<1x8x128xf32>
    tpu.vector_store %arg11[%c1_94, %c0_95, %c0_96], %287 {strides = array<i32>} : memref<2x8x128xf32, #tpu.memory_space<vmem>>, vector<1x8x128xf32>,
    %c1_i32_97 = arith.constant 1 : i32
    %288 = arith.cmpi eq, %arg0, %c1_i32_97 : i32
    %289 = arith.extui %288 : i1 to i32
    %c0_i32_98 = arith.constant 0 : i32
    %290 = arith.cmpi ne, %289, %c0_i32_98 : i32
    scf.if %290 {
      %c0_99 = arith.constant 0 : index
      %c0_100 = arith.constant 0 : index
      %291 = vector.load %arg7[%c0_99, %c0_100] : memref<128x1xf32, #tpu.memory_space<vmem>>, vector<128x1xf32>
      %cst_101 = arith.constant dense<0.000000e+00> : vector<8x1xf32>
      %292 = tpu.matmul %275, %291, %cst_101 {dimension_numbers = #tpu.dot_dimension_numbers<[1], [0], [0], [1], [0, 0, 1, 1], [], []>} : vector<8x128xf32>, vector<128x1xf32>, vector<8x1xf32> -> vector<8x1xf32>
      %c0_102 = arith.constant 0 : index
      %c0_103 = arith.constant 0 : index
      %293 = vector.load %arg8[%c0_102, %c0_103] : memref<1x1xf32, #tpu.memory_space<vmem>>, vector<1x1xf32>
      %294 = vector.broadcast %293 : vector<1x1xf32> to vector<8x1xf32>
      %295 = arith.addf %292, %294 : vector<8x1xf32>
      %296 = arith.negf %295 : vector<8x1xf32>
      %297 = math.exp %296 : vector<8x1xf32>
      %cst_104 = arith.constant 1.000000e+00 : f32
      %298 = vector.broadcast %cst_104 : f32 to vector<8x1xf32>
      %299 = arith.addf %298, %297 : vector<8x1xf32>
      %300 = arith.divf %298, %299 : vector<8x1xf32>
      %c0_105 = arith.constant 0 : index
      %c0_106 = arith.constant 0 : index
      %301 = vector.load %arg9[%c0_105, %c0_106] : memref<8x1xf32, #tpu.memory_space<vmem>>, vector<8x1xf32>
      tpu.vector_store %arg9[%c0_105, %c0_106], %300 {strides = array<i32>} : memref<8x1xf32, #tpu.memory_space<vmem>>, vector<8x1xf32>,
    } else {
    }
    return
  }
  func.func @transform_0(%arg0: i32) -> (i32, i32, i32) {
    %c0_i32 = arith.constant 0 : i32
    %c0_i32_0 = arith.constant 0 : i32
    %c0_i32_1 = arith.constant 0 : i32
    return %arg0, %c0_i32, %c0_i32_0 : i32, i32, i32
  }
  func.func @transform_1(%arg0: i32) -> (i32, i32) {
    %c0_i32 = arith.constant 0 : i32
    %c0_i32_0 = arith.constant 0 : i32
    %c0_i32_1 = arith.constant 0 : i32
    return %c0_i32, %c0_i32_0 : i32, i32
  }
  func.func @transform_2(%arg0: i32) -> (i32, i32) {
    %c0_i32 = arith.constant 0 : i32
    %c0_i32_0 = arith.constant 0 : i32
    %c0_i32_1 = arith.constant 0 : i32
    return %c0_i32, %c0_i32_0 : i32, i32
  }
  func.func @transform_3(%arg0: i32) -> (i32, i32, i32) {
    %c0_i32 = arith.constant 0 : i32
    %c0_i32_0 = arith.constant 0 : i32
    %c0_i32_1 = arith.constant 0 : i32
    %c0_i32_2 = arith.constant 0 : i32
    return %c0_i32, %c0_i32_0, %c0_i32_1 : i32, i32, i32
  }
  func.func @transform_4(%arg0: i32) -> (i32, i32) {
    %c0_i32 = arith.constant 0 : i32
    %c0_i32_0 = arith.constant 0 : i32
    %c0_i32_1 = arith.constant 0 : i32
    return %c0_i32, %c0_i32_0 : i32, i32
  }
  func.func @transform_5(%arg0: i32) -> (i32, i32, i32) {
    %c0_i32 = arith.constant 0 : i32
    %c0_i32_0 = arith.constant 0 : i32
    %c0_i32_1 = arith.constant 0 : i32
    %c0_i32_2 = arith.constant 0 : i32
    return %c0_i32, %c0_i32_0, %c0_i32_1 : i32, i32, i32
  }
  func.func @transform_6(%arg0: i32) -> (i32, i32) {
    %c0_i32 = arith.constant 0 : i32
    %c0_i32_0 = arith.constant 0 : i32
    %c0_i32_1 = arith.constant 0 : i32
    return %c0_i32, %c0_i32_0 : i32, i32
  }
  func.func @transform_7(%arg0: i32) -> (i32, i32) {
    %c0_i32 = arith.constant 0 : i32
    %c0_i32_0 = arith.constant 0 : i32
    %c0_i32_1 = arith.constant 0 : i32
    return %c0_i32, %c0_i32_0 : i32, i32
  }
  func.func @transform_8(%arg0: i32) -> (i32, i32) {
    %c0_i32 = arith.constant 0 : i32
    %c0_i32_0 = arith.constant 0 : i32
    %c0_i32_1 = arith.constant 0 : i32
    return %c0_i32, %c0_i32_0 : i32, i32
  }
}

</mosaic_0001>

<bundles_post_ra>
// kernel: lstm_net_forward.1
= control target key start
LH: loop header
LB: loop body
LE: loop exit
PB: predicated region body
PF: predicated region fallthrough
CT: control target
= control target key end

     0   :  { %s3001_s29 = smov 0   ;;  %s4411_s0 = inlined_call_operand.vmem [shape: bf16[8,8,128], index: 0, kind: input, shape index: {}]   ;;  %s4412_s1 = inlined_call_operand.vmem [shape: bf16[128,512], index: 1, kind: input, shape index: {}]   ;;  %s4413_s2 = inlined_call_operand.vmem [shape: bf16[128,512], index: 2, kind: input, shape index: {}]   ;;  %s4414_s3 = inlined_call_operand.vmem [shape: bf16[1,256,512], index: 3, kind: input, shape index: {}]   ;;  %s4415_s4 = inlined_call_operand.vmem [shape: f32[1,512], index: 4, kind: input, shape index: {}]   ;;  %s4416_s5 = inlined_call_operand.vmem [shape: f32[1,1,512], index: 5, kind: input, shape index: {}]   ;;  %s4417_s6 = inlined_call_operand.vmem [shape: f32[128,1], index: 6, kind: input, shape index: {}]   ;;  %s4418_s7 = inlined_call_operand.<no memory space> [shape: f32[1,1], index: 7, kind: input, shape index: {}]   ;;  %s4419_s8 = inlined_call_operand.vmem [shape: f32[8,1], index: 8, kind: output, shape index: {}]  }
   0x1   :  { %v13_v0 = vstv %s4418_s7 }
   0x2   :  { %14 = vst [vmem:[#allocation5] sm:$0x1] %v13_v0 }
   0x3 LB: > { %s3007_s30 = sadd.s32 4294967295, %s2947_s29   ;;  %p2292_p0 = scmp.ge.s32.totalorder %s2947_s29, 1  ;;  %s2947_s29 = sphi %s3001_s29, %s20_s29  }
   0x4   : > { %p260_p1 = scmp.lt.s32.totalorder %s2947_s29, 3 }
   0x6   : > { %p261_p2 = pnand %p2292_p0, %p260_p1 }
   0x8   : > { %264 = sbr.rel (%p261_p2) target bundleno = 1700 (0x6a4), region = 52 }
   0xd   : > { %s2293_s9 = sshll.u32 %s3007_s30, 2  ;;  %p2295_p4 = scmp.ne.s32.totalorder %s3007_s30, 0 }
   0xe   : > { %p290_p3 = scmp.lt.s32.totalorder %s2293_s9, 7 }
   0xf   : > { %299 = sbr.rel (%p2295_p4) target bundleno = 23 (0x17), region = 56 }
  0x10   : > { %s4745_s9 = smov (!%p290_p3, %s2293_s9), 7 }
  0x11   : > { %s2294_s7 = sshll.u32 %s4745_s9, 2 }
  0x12   : > { %s3015_s12 = scalar_lea.vmem %s4411_s0, %s2294_s7 }
  0x14   : > { %v2949_v1 = vmov 0.0  }
  0x15   : > { %300 = vst [vmem:[#allocation2] sm:$0xff] %v2949_v1  ;;  %301 = vst [vmem:[#allocation2 + $0x8] sm:$0xff] %v2949_v1 }
  0x16   : > { %302 = vst [vmem:[#allocation3 + $0x8] sm:$0xff] %v2949_v1  ;;  %303 = vst [vmem:[#allocation3] sm:$0xff] %v2949_v1 }
  0x17 PF: > { %v2519_v2 = vld [vmem:[%s4412_s1 + $0xe4] ss:$16 sps:$4 sm:$0xff]   ;;  %v2521_v3 = vld [vmem:[%s4412_s1 + $0xec] ss:$16 sps:$4 sm:$0xff]   ;;  %v4420_v4 = vmov 0   ;;  %p2450_p5 = scmp.ne.s32.totalorder %s3007_s30, 1 }
  0x18   : > { %566 = vmatprep.mubr.bf16.mxu0 %v4420_v4  ;;  %619 = vmatprep.mubr.bf16.mxu1 %v4420_v4  ;;  %v2523_v5 = vld [vmem:[%s4412_s1 + $0xe0] ss:$16 sps:$4 sm:$0xff]   ;;  %v2524_v6 = vld [vmem:[%s4412_s1 + $0xe8] ss:$16 sps:$4 sm:$0xff]   ;;  %v2525_v7 = vld [vmem:[%s4412_s1 + $0xc4] ss:$16 sps:$4 sm:$0xff]  }
  0x19   : > { %534 = vmatprep.subr.bf16.mxu0 %v2519_v2  ;;  %587 = vmatprep.subr.bf16.mxu1 %v2521_v3  ;;  %v2527_v8 = vld [vmem:[%s4412_s1 + $0xcc] ss:$16 sps:$4 sm:$0xff]   ;;  %v2529_v9 = vld [vmem:[%s4412_s1 + $0xc0] ss:$16 sps:$4 sm:$0xff]   ;;  %v2530_v10 = vld [vmem:[%s4412_s1 + $0xc8] ss:$16 sps:$4 sm:$0xff]  }
  0x1a   : > { %535 = vmatpush1.bf16.msra.mxu0 %v2523_v5  ;;  %588 = vmatpush1.bf16.msra.mxu1 %v2524_v6  ;;  %v2531_v11 = vld [vmem:[%s4412_s1 + $0xa4] ss:$16 sps:$4 sm:$0xff]   ;;  %v2533_v12 = vld [vmem:[%s4412_s1 + $0xac] ss:$16 sps:$4 sm:$0xff]   ;;  %v2535_v13 = vld [vmem:[%s4412_s1 + $0xa0] ss:$16 sps:$4 sm:$0xff]  }
  0x1b   : > { %536 = vmatprep.subr.bf16.mxu0 %v2525_v7  ;;  %589 = vmatprep.subr.bf16.mxu1 %v2527_v8  ;;  %v2536_v14 = vld [vmem:[%s4412_s1 + $0xa8] ss:$16 sps:$4 sm:$0xff]   ;;  %v2537_v15 = vld [vmem:[%s4412_s1 + $0x84] ss:$16 sps:$4 sm:$0xff]   ;;  %v2539_v16 = vld [vmem:[%s4412_s1 + $0x8c] ss:$16 sps:$4 sm:$0xff]  }
  0x1c   : > { %v2541_v17 = vld [vmem:[%s4412_s1 + $0x80] ss:$16 sps:$4 sm:$0xff]   ;;  %v2542_v18 = vld [vmem:[%s4412_s1 + $0x88] ss:$16 sps:$4 sm:$0xff]   ;;  %v2543_v19 = vld [vmem:[%s4412_s1 + $0x64] ss:$16 sps:$4 sm:$0xff]  }
  0x1d   : > { %v2545_v20 = vld [vmem:[%s4412_s1 + $0x6c] ss:$16 sps:$4 sm:$0xff]   ;;  %v2547_v21 = vld [vmem:[%s4412_s1 + $0x60] ss:$16 sps:$4 sm:$0xff]   ;;  %v2548_v22 = vld [vmem:[%s4412_s1 + $0x68] ss:$16 sps:$4 sm:$0xff]  }
  0x1e   : > { %537 = vmatpush1.bf16.msra.mxu0 %v2529_v9  ;;  %590 = vmatpush1.bf16.msra.mxu1 %v2530_v10  ;;  %v2549_v23 = vld [vmem:[%s4412_s1 + $0x44] ss:$16 sps:$4 sm:$0xff]   ;;  %v2551_v24 = vld [vmem:[%s4412_s1 + $0x4c] ss:$16 sps:$4 sm:$0xff]   ;;  %v2553_v25 = vld [vmem:[%s4412_s1 + $0x40] ss:$16 sps:$4 sm:$0xff]  }
  0x1f   : > { %538 = vmatprep.subr.bf16.mxu0 %v2531_v11  ;;  %591 = vmatprep.subr.bf16.mxu1 %v2533_v12  ;;  %v2554_v26 = vld [vmem:[%s4412_s1 + $0x48] ss:$16 sps:$4 sm:$0xff]   ;;  %v2555_v27 = vld [vmem:[%s4412_s1 + $0x24] ss:$16 sps:$4 sm:$0xff]   ;;  %v2557_v28 = vld [vmem:[%s4412_s1 + $0x2c] ss:$16 sps:$4 sm:$0xff]  }
  0x20   : > { %v2559_v29 = vld [vmem:[%s4412_s1 + $0x20] ss:$16 sps:$4 sm:$0xff]   ;;  %v2560_v30 = vld [vmem:[%s4412_s1 + $0x28] ss:$16 sps:$4 sm:$0xff]   ;;  %v2561_v31 = vld [vmem:[%s4412_s1 + $0x4] ss:$16 sps:$4 sm:$0xff]  }
  0x21   : > { %v2563_v32 = vld [vmem:[%s4412_s1 + $0xc] ss:$16 sps:$4 sm:$0xff]   ;;  %v2565_v33 = vld [vmem:[%s4412_s1] ss:$16 sps:$4 sm:$0xff]   ;;  %v2566_v34 = vld [vmem:[%s4412_s1 + $0x8] ss:$16 sps:$4 sm:$0xff]  }
  0x22   : > { %539 = vmatpush1.bf16.msra.mxu0 %v2535_v13  ;;  %592 = vmatpush1.bf16.msra.mxu1 %v2536_v14  ;;  %v3119_v35 = vld [vmem:[%s4413_s2 + $0xe4] ss:$16 sps:$4 sm:$0xff]   ;;  %v3124_v36 = vld [vmem:[%s4413_s2 + $0xec] ss:$16 sps:$4 sm:$0xff]   ;;  %v3130_v38 = vld [vmem:[%s4413_s2 + $0xe0] ss:$16 sps:$4 sm:$0xff]  }
  0x23   : > { %540 = vmatprep.subr.bf16.mxu0 %v2537_v15  ;;  %593 = vmatprep.subr.bf16.mxu1 %v2539_v16  ;;  %4552 = vst [vmem:[#allocation6_spill] sm:$0xff] %v3119_v35  ;;  %4553 = vst [vmem:[#allocation7_spill] sm:$0xff] %v3124_v36  ;;  %v2567_v37 = vld [vmem:[%s3015_s12] sm:$0xff]   ;;  %v3135_v39 = vld [vmem:[%s4413_s2 + $0xe8] ss:$16 sps:$4 sm:$0xff]  }
  0x24   : > { %v3140_v40 = vld [vmem:[%s4413_s2 + $0xc4] ss:$16 sps:$4 sm:$0xff]   ;;  %v3147_v41 = vld [vmem:[%s4413_s2 + $0xcc] ss:$16 sps:$4 sm:$0xff]   ;;  %v3152_v42 = vld [vmem:[%s4413_s2 + $0xc0] ss:$16 sps:$4 sm:$0xff]  }
  0x25   : > { %v3157_v43 = vld [vmem:[%s4413_s2 + $0xc8] ss:$16 sps:$4 sm:$0xff]   ;;  %v3164_v44 = vld [vmem:[%s4413_s2 + $0xa4] ss:$16 sps:$4 sm:$0xff]   ;;  %v3171_v45 = vld [vmem:[%s4413_s2 + $0xac] ss:$16 sps:$4 sm:$0xff]  }
  0x26   : > { %541 = vmatpush1.bf16.msra.mxu0 %v2541_v17  ;;  %594 = vmatpush1.bf16.msra.mxu1 %v2542_v18  ;;  %v3176_v46 = vld [vmem:[%s4413_s2 + $0xa0] ss:$16 sps:$4 sm:$0xff]   ;;  %v2598_v47 = vld [vmem:[%s3015_s12 + $0x8] sm:$0xff]   ;;  %v3193_v49 = vld [vmem:[%s4413_s2 + $0x84] ss:$16 sps:$4 sm:$0xff]  }
  0x27   : > { %542 = vmatprep.subr.bf16.mxu0 %v2543_v19  ;;  %595 = vmatprep.subr.bf16.mxu1 %v2545_v20  ;;  %v3186_v48 = vld [vmem:[%s4413_s2 + $0xa8] ss:$16 sps:$4 sm:$0xff]   ;;  %v3198_v50 = vld [vmem:[%s4413_s2 + $0x8c] ss:$16 sps:$4 sm:$0xff]   ;;  %v3205_v51 = vld [vmem:[%s4413_s2 + $0x80] ss:$16 sps:$4 sm:$0xff]  }
  0x28   : > { %v3210_v52 = vld [vmem:[%s4413_s2 + $0x88] ss:$16 sps:$4 sm:$0xff]   ;;  %v3215_v53 = vld [vmem:[%s4413_s2 + $0x64] ss:$16 sps:$4 sm:$0xff]   ;;  %v3222_v54 = vld [vmem:[%s4413_s2 + $0x6c] ss:$16 sps:$4 sm:$0xff]  }
  0x29   : > { %v3227_v55 = vld [vmem:[%s4413_s2 + $0x60] ss:$16 sps:$4 sm:$0xff]   ;;  %v3232_v56 = vld [vmem:[%s4413_s2 + $0x68] ss:$16 sps:$4 sm:$0xff]   ;;  %v3239_v57 = vld [vmem:[%s4413_s2 + $0x44] ss:$16 sps:$4 sm:$0xff]  }
  0x2a   : > { %543 = vmatpush1.bf16.msra.mxu0 %v2547_v21  ;;  %596 = vmatpush1.bf16.msra.mxu1 %v2548_v22  ;;  %v3244_v58 = vld [vmem:[%s4413_s2 + $0x4c] ss:$16 sps:$4 sm:$0xff]   ;;  %v3253_v59 = vld [vmem:[%s4413_s2 + $0x40] ss:$16 sps:$4 sm:$0xff]   ;;  %v3258_v60 = vld [vmem:[%s4413_s2 + $0x48] ss:$16 sps:$4 sm:$0xff]  }
  0x2b   : > { %544 = vmatprep.subr.bf16.mxu0 %v2549_v23  ;;  %597 = vmatprep.subr.bf16.mxu1 %v2551_v24  ;;  %v3263_v61 = vld [vmem:[%s4413_s2 + $0x24] ss:$16 sps:$4 sm:$0xff]   ;;  %v3268_v62 = vld [vmem:[%s4413_s2 + $0x2c] ss:$16 sps:$4 sm:$0xff]   ;;  %v3277_v63 = vld [vmem:[%s4413_s2 + $0x20] ss:$16 sps:$4 sm:$0xff]  }
  0x2c   : > { %v3282_v0 = vld [vmem:[%s4413_s2 + $0x28] ss:$16 sps:$4 sm:$0xff]   ;;  %v3287_v1 = vld [vmem:[%s4413_s2 + $0x4] ss:$16 sps:$4 sm:$0xff]   ;;  %v3292_v2 = vld [vmem:[%s4413_s2 + $0xc] ss:$16 sps:$4 sm:$0xff]  }
  0x2d   : > { %v3301_v3 = vld [vmem:[%s4413_s2] ss:$16 sps:$4 sm:$0xff]   ;;  %v3306_v5 = vld [vmem:[%s4413_s2 + $0x8] ss:$16 sps:$4 sm:$0xff]   ;;  %v3317_v8 = vld [vmem:[%s4414_s3 + $0xe4] ss:$16 sps:$4 sm:$0xff]  }
  0x2e   : > { %545 = vmatpush1.bf16.msra.mxu0 %v2553_v25  ;;  %598 = vmatpush1.bf16.msra.mxu1 %v2554_v26  ;;  %v678_v6 = vld [vmem:[#allocation2] sm:$0xff]  ;;  %v3322_v9 = vld [vmem:[%s4414_s3 + $0xec] ss:$16 sps:$4 sm:$0xff]   ;;  %v3332_v11 = vld [vmem:[%s4414_s3 + $0xe8] ss:$16 sps:$4 sm:$0xff]  }
  0x2f   : > { %546 = vmatprep.subr.bf16.mxu0 %v2555_v27  ;;  %599 = vmatprep.subr.bf16.mxu1 %v2557_v28  ;;  %v688_v7 = vpack.c.bf16 %v678_v6, %v678_v6  ;;  %v3327_v10 = vld [vmem:[%s4414_s3 + $0xe0] ss:$16 sps:$4 sm:$0xff]   ;;  %v3337_v12 = vld [vmem:[%s4414_s3 + $0xc4] ss:$16 sps:$4 sm:$0xff]   ;;  %v3342_v13 = vld [vmem:[%s4414_s3 + $0xcc] ss:$16 sps:$4 sm:$0xff]  }
  0x30   : > { %v3351_v14 = vld [vmem:[%s4414_s3 + $0xc0] ss:$16 sps:$4 sm:$0xff]   ;;  %v3356_v15 = vld [vmem:[%s4414_s3 + $0xc8] ss:$16 sps:$4 sm:$0xff]   ;;  %v3365_v16 = vld [vmem:[%s4414_s3 + $0xa4] ss:$16 sps:$4 sm:$0xff]  }
  0x31   : > { %4554 = vst [vmem:[#allocation8_spill] sm:$0xff] %v3356_v15  ;;  %4555 = vst [vmem:[#allocation9_spill] sm:$0xff] %v3365_v16  ;;  %v3370_v17 = vld [vmem:[%s4414_s3 + $0xac] ss:$16 sps:$4 sm:$0xff]   ;;  %v3375_v18 = vld [vmem:[%s4414_s3 + $0xa0] ss:$16 sps:$4 sm:$0xff]  }
  0x32   : > { %547 = vmatpush1.bf16.msra.mxu0 %v2559_v29  ;;  %600 = vmatpush1.bf16.msra.mxu1 %v2560_v30  ;;  %4556 = vst [vmem:[#allocation10_spill] sm:$0xff] %v3370_v17  ;;  %4557 = vst [vmem:[#allocation11_spill] sm:$0xff] %v3375_v18  ;;  %v3380_v19 = vld [vmem:[%s4414_s3 + $0xa8] ss:$16 sps:$4 sm:$0xff]   ;;  %v3389_v20 = vld [vmem:[%s4414_s3 + $0x84] ss:$16 sps:$4 sm:$0xff]  }
  0x33   : > { %548 = vmatprep.subr.bf16.mxu0 %v2561_v31  ;;  %601 = vmatprep.subr.bf16.mxu1 %v2563_v32  ;;  %4558 = vst [vmem:[#allocation12_spill] sm:$0xff] %v3380_v19  ;;  %4559 = vst [vmem:[#allocation13_spill] sm:$0xff] %v3389_v20  ;;  %v3394_v21 = vld [vmem:[%s4414_s3 + $0x8c] ss:$16 sps:$4 sm:$0xff]   ;;  %v3399_v22 = vld [vmem:[%s4414_s3 + $0x80] ss:$16 sps:$4 sm:$0xff]  }
  0x34   : > { %4560 = vst [vmem:[#allocation14_spill] sm:$0xff] %v3394_v21  ;;  %4561 = vst [vmem:[#allocation15_spill] sm:$0xff] %v3399_v22  ;;  %v3404_v23 = vld [vmem:[%s4414_s3 + $0x88] ss:$16 sps:$4 sm:$0xff]   ;;  %v3413_v24 = vld [vmem:[%s4414_s3 + $0x64] ss:$16 sps:$4 sm:$0xff]  }
  0x35   : > { %4562 = vst [vmem:[#allocation16_spill] sm:$0xff] %v3404_v23  ;;  %4563 = vst [vmem:[#allocation17_spill] sm:$0xff] %v3413_v24  ;;  %v3418_v25 = vld [vmem:[%s4414_s3 + $0x6c] ss:$16 sps:$4 sm:$0xff]   ;;  %v3423_v26 = vld [vmem:[%s4414_s3 + $0x60] ss:$16 sps:$4 sm:$0xff]  }
  0x36   : > { %549 = vmatpush1.bf16.msra.mxu0 %v2565_v33  ;;  %602 = vmatpush1.bf16.msra.mxu1 %v2566_v34  ;;  %4564 = vst [vmem:[#allocation18_spill] sm:$0xff] %v3418_v25  ;;  %4565 = vst [vmem:[#allocation19_spill] sm:$0xff] %v3423_v26  ;;  %v3428_v27 = vld [vmem:[%s4414_s3 + $0x68] ss:$16 sps:$4 sm:$0xff]   ;;  %v3437_v28 = vld [vmem:[%s4414_s3 + $0x44] ss:$16 sps:$4 sm:$0xff]  }
  0x37   : > { %881 = vmatprep.subr.bf16.mxu0 %v3119_v35  ;;  %922 = vmatprep.subr.bf16.mxu1 %v3124_v36  ;;  %4566 = vst [vmem:[#allocation20_spill] sm:$0xff] %v3428_v27  ;;  %4567 = vst [vmem:[#allocation21_spill] sm:$0xff] %v3437_v28  ;;  %v3442_v29 = vld [vmem:[%s4414_s3 + $0x4c] ss:$16 sps:$4 sm:$0xff]   ;;  %v3447_v30 = vld [vmem:[%s4414_s3 + $0x40] ss:$16 sps:$4 sm:$0xff]  }
  0x38   : > { %4568 = vst [vmem:[#allocation22_spill] sm:$0xff] %v3442_v29  ;;  %4569 = vst [vmem:[#allocation23_spill] sm:$0xff] %v3447_v30  ;;  %v3452_v31 = vld [vmem:[%s4414_s3 + $0x48] ss:$16 sps:$4 sm:$0xff]   ;;  %v3461_v32 = vld [vmem:[%s4414_s3 + $0x24] ss:$16 sps:$4 sm:$0xff]  }
  0x39   : > { %567 = vmatmul.mubr.bf16.vlgmr.msra.gmra.mxu0 %v2567_v37  ;;  %620 = vmatmul.mubr.bf16.vlgmr.msra.gmra.mxu1 %v2567_v37  ;;  %4570 = vst [vmem:[#allocation24_spill] sm:$0xff] %v3452_v31  ;;  %4571 = vst [vmem:[#allocation25_spill] sm:$0xff] %v3461_v32  ;;  %v3466_v33 = vld [vmem:[%s4414_s3 + $0x2c] ss:$16 sps:$4 sm:$0xff]   ;;  %v3471_v34 = vld [vmem:[%s4414_s3 + $0x20] ss:$16 sps:$4 sm:$0xff]  }
  0x3a   : > { %882 = vmatpush1.bf16.msra.mxu0 %v3130_v38  ;;  %923 = vmatpush1.bf16.msra.mxu1 %v3135_v39  ;;  %4572 = vst [vmem:[#allocation26_spill] sm:$0xff] %v3466_v33  ;;  %4573 = vst [vmem:[#allocation27_spill] sm:$0xff] %v3471_v34  ;;  %v3476_v37 = vld [vmem:[%s4414_s3 + $0x28] ss:$16 sps:$4 sm:$0xff]   ;;  %v3490_v6 = vld [vmem:[%s4414_s3 + $0xc] ss:$16 sps:$4 sm:$0xff]  }
  0x3b   : > { %883 = vmatprep.subr.bf16.mxu0 %v3140_v40  ;;  %924 = vmatprep.subr.bf16.mxu1 %v3147_v41  ;;  %4574 = vst [vmem:[#allocation28_spill] sm:$0xff] %v3476_v37  ;;  %4576 = vst [vmem:[#allocation30_spill] sm:$0xff] %v3490_v6 }
  0x3c   : > { %576 = vmatprep.mubr.bf16.mxu0 %v4420_v4  ;;  %629 = vmatprep.mubr.bf16.mxu1 %v4420_v4 }
  0x3e   : > { %884 = vmatpush1.bf16.msra.mxu0 %v3152_v42  ;;  %925 = vmatpush1.bf16.msra.mxu1 %v3157_v43 }
  0x3f   : > { %885 = vmatprep.subr.bf16.mxu0 %v3164_v44  ;;  %926 = vmatprep.subr.bf16.mxu1 %v3171_v45 }
  0x41   : > { %577 = vmatmul.mubr.bf16.gmra.mxu0 %v2598_v47  ;;  %630 = vmatmul.mubr.bf16.gmra.mxu1 %v2598_v47  ;;  %v3485_v47 = vld [vmem:[%s4414_s3 + $0x4] ss:$16 sps:$4 sm:$0xff]  }
  0x42   : > { %886 = vmatpush1.bf16.msra.mxu0 %v3176_v46  ;;  %927 = vmatpush1.bf16.msra.mxu1 %v3186_v48  ;;  %4575 = vst [vmem:[#allocation29_spill] sm:$0xff] %v3485_v47 }
  0x43   : > { %887 = vmatprep.subr.bf16.mxu0 %v3193_v49  ;;  %928 = vmatprep.subr.bf16.mxu1 %v3198_v50 }
  0x44   : > { %913 = vmatprep.mubr.bf16.mxu0 %v4420_v4  ;;  %954 = vmatprep.mubr.bf16.mxu1 %v4420_v4  ;;  %v3500_v4 = vld [vmem:[%s4414_s3 + $0x8] ss:$16 sps:$4 sm:$0xff]  }
  0x45   : > { %4578 = vst [vmem:[#allocation32_spill] sm:$0xff] %v3500_v4 }
  0x46   : > { %888 = vmatpush1.bf16.msra.mxu0 %v3205_v51  ;;  %929 = vmatpush1.bf16.msra.mxu1 %v3210_v52 }
  0x47   : > { %889 = vmatprep.subr.bf16.mxu0 %v3215_v53  ;;  %930 = vmatprep.subr.bf16.mxu1 %v3222_v54 }
  0x4a   : > { %890 = vmatpush1.bf16.msra.mxu0 %v3227_v55  ;;  %931 = vmatpush1.bf16.msra.mxu1 %v3232_v56 }
  0x4b   : > { %891 = vmatprep.subr.bf16.mxu0 %v3239_v57  ;;  %932 = vmatprep.subr.bf16.mxu1 %v3244_v58 }
  0x4e   : > { %892 = vmatpush1.bf16.msra.mxu0 %v3253_v59  ;;  %933 = vmatpush1.bf16.msra.mxu1 %v3258_v60 }
  0x4f   : > { %893 = vmatprep.subr.bf16.mxu0 %v3263_v61  ;;  %934 = vmatprep.subr.bf16.mxu1 %v3268_v62 }
  0x52   : > { %894 = vmatpush1.bf16.msra.mxu0 %v3277_v63  ;;  %935 = vmatpush1.bf16.msra.mxu1 %v3282_v0 }
  0x53   : > { %895 = vmatprep.subr.bf16.mxu0 %v3287_v1  ;;  %936 = vmatprep.subr.bf16.mxu1 %v3292_v2 }
  0x56   : > { %896 = vmatpush1.bf16.msra.mxu0 %v3301_v3  ;;  %937 = vmatpush1.bf16.msra.mxu1 %v3306_v5 }
  0x57   : > { %1377 = vmatprep.subr.bf16.mxu0 %v3317_v8  ;;  %1418 = vmatprep.subr.bf16.mxu1 %v3322_v9 }
  0x59   : > { %914 = vmatmul.mubr.bf16.vlgmr.msra.gmra.mxu0 %v688_v7  ;;  %955 = vmatmul.mubr.bf16.vlgmr.msra.gmra.mxu1 %v688_v7  ;;  %v3495_v7 = vld [vmem:[%s4414_s3] ss:$16 sps:$4 sm:$0xff]  }
  0x5a   : > { %1378 = vmatpush1.bf16.msra.mxu0 %v3327_v10  ;;  %1419 = vmatpush1.bf16.msra.mxu1 %v3332_v11  ;;  %4577 = vst [vmem:[#allocation31_spill] sm:$0xff] %v3495_v7 }
  0x5b   : > { %1379 = vmatprep.subr.bf16.mxu0 %v3337_v12  ;;  %1420 = vmatprep.subr.bf16.mxu1 %v3342_v13 }
  0x5e   : > { %1380 = vmatpush1.bf16.msra.mxu0 %v3351_v14  ;;  %1421 = vmatpush1.bf16.msra.mxu1 %v3356_v15 }
  0x5f   : > { %1381 = vmatprep.subr.bf16.mxu0 %v3365_v16  ;;  %1422 = vmatprep.subr.bf16.mxu1 %v3370_v17 }
  0x62   : > { %1382 = vmatpush1.bf16.msra.mxu0 %v3375_v18  ;;  %1423 = vmatpush1.bf16.msra.mxu1 %v3380_v19 }
  0x63   : > { %1383 = vmatprep.subr.bf16.mxu0 %v3389_v20  ;;  %1424 = vmatprep.subr.bf16.mxu1 %v3394_v21 }
  0x66   : > { %1384 = vmatpush1.bf16.msra.mxu0 %v3399_v22  ;;  %1425 = vmatpush1.bf16.msra.mxu1 %v3404_v23 }
  0x67   : > { %1385 = vmatprep.subr.bf16.mxu0 %v3413_v24  ;;  %1426 = vmatprep.subr.bf16.mxu1 %v3418_v25 }
  0x6a   : > { %1386 = vmatpush1.bf16.msra.mxu0 %v3423_v26  ;;  %1427 = vmatpush1.bf16.msra.mxu1 %v3428_v27 }
  0x6b   : > { %1387 = vmatprep.subr.bf16.mxu0 %v3437_v28  ;;  %1428 = vmatprep.subr.bf16.mxu1 %v3442_v29 }
  0x6e   : > { %1388 = vmatpush1.bf16.msra.mxu0 %v3447_v30  ;;  %1429 = vmatpush1.bf16.msra.mxu1 %v3452_v31 }
  0x6f   : > { %1389 = vmatprep.subr.bf16.mxu0 %v3461_v32  ;;  %1430 = vmatprep.subr.bf16.mxu1 %v3466_v33  ;;  %v680_v33 = vld [vmem:[#allocation2 + $0x8] sm:$0xff] }
  0x70   : > { %v992_v32 = vpack.c.bf16 %v680_v33, %v680_v33  ;;  %v3680_v33 = vld [vmem:[%s4414_s3 + $0x10c] ss:$16 sps:$4 sm:$0xff]  }
  0x71   : > { %4608 = vst [vmem:[#allocation62_spill] sm:$0xff] %v3680_v33 }
  0x72   : > { %1390 = vmatpush1.bf16.msra.mxu0 %v3471_v34  ;;  %1431 = vmatpush1.bf16.msra.mxu1 %v3476_v37  ;;  %v3509_v37 = vld [vmem:[%s4414_s3 + $0x1e4] ss:$16 sps:$4 sm:$0xff]   ;;  %v3514_v34 = vld [vmem:[%s4414_s3 + $0x1ec] ss:$16 sps:$4 sm:$0xff]  }
  0x73   : > { %1391 = vmatprep.subr.bf16.mxu0 %v3485_v47  ;;  %1432 = vmatprep.subr.bf16.mxu1 %v3490_v6  ;;  %4579 = vst [vmem:[#allocation33_spill] sm:$0xff] %v3509_v37  ;;  %4580 = vst [vmem:[#allocation34_spill] sm:$0xff] %v3514_v34  ;;  %v3519_v47 = vld [vmem:[%s4414_s3 + $0x1e0] ss:$16 sps:$4 sm:$0xff]   ;;  %v3538_v6 = vld [vmem:[%s4414_s3 + $0x1cc] ss:$16 sps:$4 sm:$0xff]  }
  0x74   : > { %4581 = vst [vmem:[#allocation35_spill] sm:$0xff] %v3519_v47  ;;  %4584 = vst [vmem:[#allocation38_spill] sm:$0xff] %v3538_v6  ;;  %1409 = vmatprep.mubr.bf16.mxu0 %v992_v32  ;;  %1450 = vmatprep.mubr.bf16.mxu1 %v992_v32  ;;  %v3675_v32 = vld [vmem:[%s4414_s3 + $0x104] ss:$16 sps:$4 sm:$0xff]  }
  0x75   : > { %4607 = vst [vmem:[#allocation61_spill] sm:$0xff] %v3675_v32 }
  0x76   : > { %1392 = vmatpush1.bf16.msra.mxu0 %v3495_v7  ;;  %1433 = vmatpush1.bf16.msra.mxu1 %v3500_v4  ;;  %v3524_v7 = vld [vmem:[%s4414_s3 + $0x1e8] ss:$16 sps:$4 sm:$0xff]   ;;  %v3533_v4 = vld [vmem:[%s4414_s3 + $0x1c4] ss:$16 sps:$4 sm:$0xff]  }
  0x77   : > { %4582 = vst [vmem:[#allocation36_spill] sm:$0xff] %v3524_v7  ;;  %1393 = vmatprep.subr.bf16.mxu0 %v3509_v37  ;;  %1434 = vmatprep.subr.bf16.mxu1 %v3514_v34  ;;  %4583 = vst [vmem:[#allocation37_spill] sm:$0xff] %v3533_v4  ;;  %v3543_v37 = vld [vmem:[%s4414_s3 + $0x1c0] ss:$16 sps:$4 sm:$0xff]   ;;  %v3562_v34 = vld [vmem:[%s4414_s3 + $0x1ac] ss:$16 sps:$4 sm:$0xff]  }
  0x78   : > { %4585 = vst [vmem:[#allocation39_spill] sm:$0xff] %v3543_v37  ;;  %4588 = vst [vmem:[#allocation42_spill] sm:$0xff] %v3562_v34 }
  0x7a   : > { %1394 = vmatpush2.bf16.msra.mxu0 %v3519_v47  ;;  %1435 = vmatpush2.bf16.msra.mxu1 %v3524_v7  ;;  %v3548_v47 = vld [vmem:[%s4414_s3 + $0x1c8] ss:$16 sps:$4 sm:$0xff]   ;;  %v3557_v7 = vld [vmem:[%s4414_s3 + $0x1a4] ss:$16 sps:$4 sm:$0xff]  }
  0x7b   : > { %4586 = vst [vmem:[#allocation40_spill] sm:$0xff] %v3548_v47  ;;  %1395 = vmatprep.subr.bf16.mxu0 %v3533_v4  ;;  %1436 = vmatprep.subr.bf16.mxu1 %v3538_v6  ;;  %4587 = vst [vmem:[#allocation41_spill] sm:$0xff] %v3557_v7  ;;  %v3567_v4 = vld [vmem:[%s4414_s3 + $0x1a0] ss:$16 sps:$4 sm:$0xff]   ;;  %v3586_v6 = vld [vmem:[%s4414_s3 + $0x18c] ss:$16 sps:$4 sm:$0xff]  }
  0x7c   : > { %4589 = vst [vmem:[#allocation43_spill] sm:$0xff] %v3567_v4  ;;  %4592 = vst [vmem:[#allocation46_spill] sm:$0xff] %v3586_v6 }
  0x7e   : > { %1396 = vmatpush2.bf16.msra.mxu0 %v3543_v37  ;;  %1437 = vmatpush2.bf16.msra.mxu1 %v3548_v47  ;;  %v3572_v37 = vld [vmem:[%s4414_s3 + $0x1a8] ss:$16 sps:$4 sm:$0xff]   ;;  %v3581_v47 = vld [vmem:[%s4414_s3 + $0x184] ss:$16 sps:$4 sm:$0xff]  }
  0x7f   : > { %4590 = vst [vmem:[#allocation44_spill] sm:$0xff] %v3572_v37  ;;  %1397 = vmatprep.subr.bf16.mxu0 %v3557_v7  ;;  %1438 = vmatprep.subr.bf16.mxu1 %v3562_v34  ;;  %4591 = vst [vmem:[#allocation45_spill] sm:$0xff] %v3581_v47  ;;  %v3591_v7 = vld [vmem:[%s4414_s3 + $0x180] ss:$16 sps:$4 sm:$0xff]   ;;  %v3608_v34 = vld [vmem:[%s4414_s3 + $0x16c] ss:$16 sps:$4 sm:$0xff]  }
  0x80   : > { %4593 = vst [vmem:[#allocation47_spill] sm:$0xff] %v3591_v7  ;;  %4596 = vst [vmem:[#allocation50_spill] sm:$0xff] %v3608_v34 }
  0x82   : > { %1398 = vmatpush2.bf16.msra.mxu0 %v3567_v4  ;;  %1439 = vmatpush2.bf16.msra.mxu1 %v3572_v37  ;;  %v3596_v4 = vld [vmem:[%s4414_s3 + $0x188] ss:$16 sps:$4 sm:$0xff]   ;;  %v3603_v37 = vld [vmem:[%s4414_s3 + $0x164] ss:$16 sps:$4 sm:$0xff]  }
  0x83   : > { %4594 = vst [vmem:[#allocation48_spill] sm:$0xff] %v3596_v4  ;;  %1399 = vmatprep.subr.bf16.mxu0 %v3581_v47  ;;  %1440 = vmatprep.subr.bf16.mxu1 %v3586_v6  ;;  %4595 = vst [vmem:[#allocation49_spill] sm:$0xff] %v3603_v37  ;;  %v3615_v47 = vld [vmem:[%s4414_s3 + $0x160] ss:$16 sps:$4 sm:$0xff]   ;;  %v3620_v6 = vld [vmem:[%s4414_s3 + $0x168] ss:$16 sps:$4 sm:$0xff]  }
  0x84   : > { %4597 = vst [vmem:[#allocation51_spill] sm:$0xff] %v3615_v47  ;;  %4598 = vst [vmem:[#allocation52_spill] sm:$0xff] %v3620_v6 }
  0x86   : > { %1400 = vmatpush2.bf16.msra.mxu0 %v3591_v7  ;;  %1441 = vmatpush2.bf16.msra.mxu1 %v3596_v4  ;;  %v3627_v7 = vld [vmem:[%s4414_s3 + $0x144] ss:$16 sps:$4 sm:$0xff]   ;;  %v3632_v4 = vld [vmem:[%s4414_s3 + $0x14c] ss:$16 sps:$4 sm:$0xff]  }
  0x87   : > { %1401 = vmatprep.subr.bf16.mxu0 %v3603_v37  ;;  %1442 = vmatprep.subr.bf16.mxu1 %v3608_v34  ;;  %4599 = vst [vmem:[#allocation53_spill] sm:$0xff] %v3627_v7  ;;  %4600 = vst [vmem:[#allocation54_spill] sm:$0xff] %v3632_v4  ;;  %v3639_v37 = vld [vmem:[%s4414_s3 + $0x140] ss:$16 sps:$4 sm:$0xff]   ;;  %v3644_v34 = vld [vmem:[%s4414_s3 + $0x148] ss:$16 sps:$4 sm:$0xff]  }
  0x88   : > { %4601 = vst [vmem:[#allocation55_spill] sm:$0xff] %v3639_v37  ;;  %4602 = vst [vmem:[#allocation56_spill] sm:$0xff] %v3644_v34 }
  0x8a   : > { %1402 = vmatpush2.bf16.msra.mxu0 %v3615_v47  ;;  %1443 = vmatpush2.bf16.msra.mxu1 %v3620_v6  ;;  %v3651_v47 = vld [vmem:[%s4414_s3 + $0x124] ss:$16 sps:$4 sm:$0xff]   ;;  %v3656_v6 = vld [vmem:[%s4414_s3 + $0x12c] ss:$16 sps:$4 sm:$0xff]  }
  0x8b   : > { %1403 = vmatprep.subr.bf16.mxu0 %v3627_v7  ;;  %1444 = vmatprep.subr.bf16.mxu1 %v3632_v4  ;;  %4603 = vst [vmem:[#allocation57_spill] sm:$0xff] %v3651_v47  ;;  %4604 = vst [vmem:[#allocation58_spill] sm:$0xff] %v3656_v6  ;;  %v3663_v4 = vld [vmem:[%s4414_s3 + $0x120] ss:$16 sps:$4 sm:$0xff]   ;;  %v3668_v7 = vld [vmem:[%s4414_s3 + $0x128] ss:$16 sps:$4 sm:$0xff]  }
  0x8c   : > { %4605 = vst [vmem:[#allocation59_spill] sm:$0xff] %v3663_v4  ;;  %4606 = vst [vmem:[#allocation60_spill] sm:$0xff] %v3668_v7 }
  0x8e   : > { %1404 = vmatpush2.bf16.msra.mxu0 %v3639_v37  ;;  %1445 = vmatpush2.bf16.msra.mxu1 %v3644_v34 }
  0x8f   : > { %1405 = vmatprep.subr.bf16.mxu0 %v3651_v47  ;;  %1446 = vmatprep.subr.bf16.mxu1 %v3656_v6  ;;  %v3687_v47 = vld [vmem:[%s4414_s3 + $0x100] ss:$16 sps:$4 sm:$0xff]   ;;  %v3692_v6 = vld [vmem:[%s4414_s3 + $0x108] ss:$16 sps:$4 sm:$0xff]  }
  0x90   : > { %4609 = vst [vmem:[#allocation63_spill] sm:$0xff] %v3687_v47  ;;  %4610 = vst [vmem:[#allocation64_spill] sm:$0xff] %v3692_v6 }
  0x92   : > { %1406 = vmatpush2.bf16.msra.mxu0 %v3663_v4  ;;  %1447 = vmatpush2.bf16.msra.mxu1 %v3668_v7  ;;  %v342_v7 = vlaneseq }
  0x93   : > { %1407 = vmatprep.subr.bf16.mxu0 %v3675_v32  ;;  %1448 = vmatprep.subr.bf16.mxu1 %v3680_v33  ;;  %v340_v33 = vld [vmem:[%s4415_s4] sm:$0xf] }
  0x94   : > { %v3700_v4 = vshrl.u32 %v342_v7, 7 }
  0x96   : > { %1408 = vmatpush2.bf16.msra.mxu0 %v3687_v47  ;;  %1449 = vmatpush2.bf16.msra.mxu1 %v3692_v6  ;;  %4611 = vst [vmem:[#allocation65_spill] sm:$0xff] %v3700_v4  ;;  %v4524_v34 = vsub.s32 2, %v3700_v4  ;;  %v4529_v37 = vsub.s32 0, %v3700_v4  ;;  %v4532_v31 = vsub.s32 3, %v3700_v4  ;;  %v4539_v6 = vsub.s32 1, %v3700_v4 }
  0x97   : > { %1488 = vmatprep.subr.bf16.mxu0 %v3119_v35  ;;  %1529 = vmatprep.subr.bf16.mxu1 %v3124_v36 }
  0x98   : > { %v353_v36 = vrot.slane %v340_v33, %v4524_v34  ;;  %v345_v30 = vrot.slane %v340_v33, %v4529_v37  ;;  %v357_v29 = vrot.slane %v340_v33, %v4532_v31  ;;  %v349_v26 = vrot.slane %v340_v33, %v4539_v6 }
  0xf9   : > { %v568_v47 = vpop.f32.mrf.mxu0  ;;  %v621_v32 = vpop.f32.mrf.mxu1 }
  0xfb   : > { %v570_v35 = vpop.f32.mrf.mxu0  ;;  %v623_v7 = vpop.f32.mrf.mxu1 }
  0xfd   : > { %v572_v28 = vpop.f32.mrf.mxu0  ;;  %v625_v27 = vpop.f32.mrf.mxu1 }
  0xfe   : > { %v3717_v25 = vadd.f32 %v572_v28, %v345_v30  ;;  %v3719_v24 = vadd.f32 %v625_v27, %v353_v36 }
  0xff   : > { %v574_v23 = vpop.f32.mrf.mxu0  ;;  %v627_v22 = vpop.f32.mrf.mxu1 }
 0x100   : > { %4612 = vst [vmem:[#allocation66_spill] sm:$0xff] %v3717_v25  ;;  %4613 = vst [vmem:[#allocation67_spill] sm:$0xff] %v3719_v24  ;;  %v3721_v34 = vadd.f32 %v574_v23, %v349_v26  ;;  %v3723_v21 = vadd.f32 %v627_v22, %v357_v29 }
 0x101   : > { %v578_v20 = vpop.f32.mrf.mxu0  ;;  %v631_v37 = vpop.f32.mrf.mxu1 }
 0x102   : > { %4614 = vst [vmem:[#allocation68_spill] sm:$0xff] %v3721_v34  ;;  %4615 = vst [vmem:[#allocation69_spill] sm:$0xff] %v3723_v21  ;;  %v3725_v19 = vadd.f32 %v578_v20, %v345_v30  ;;  %v3727_v31 = vadd.f32 %v631_v37, %v353_v36  ;;  %v569_v37 = vadd.f32 %v568_v47, %v345_v30 }
 0x103   : > { %v580_v18 = vpop.f32.mrf.mxu0  ;;  %v633_v17 = vpop.f32.mrf.mxu1  ;;  %v571_v34 = vadd.f32 %v570_v35, %v349_v26 }
 0x104   : > { %4616 = vst [vmem:[#allocation70_spill] sm:$0xff] %v3725_v19  ;;  %4617 = vst [vmem:[#allocation71_spill] sm:$0xff] %v3727_v31  ;;  %v3729_v4 = vadd.f32 %v580_v18, %v349_v26  ;;  %v3731_v28 = vadd.f32 %v633_v17, %v357_v29 }
 0x105   : > { %v582_v27 = vpop.f32.mrf.mxu0  ;;  %v635_v33 = vpop.f32.mrf.mxu1 }
 0x106   : > { %4618 = vst [vmem:[#allocation72_spill] sm:$0xff] %v3729_v4  ;;  %4619 = vst [vmem:[#allocation73_spill] sm:$0xff] %v3731_v28  ;;  %v3733_v6 = vadd.f32 %v582_v27, %v345_v30  ;;  %v3735_v23 = vadd.f32 %v635_v33, %v353_v36 }
 0x107   : > { %v584_v22 = vpop.f32.mrf.mxu0  ;;  %v637_v24 = vpop.f32.mrf.mxu1 }
 0x108   : > { %4620 = vst [vmem:[#allocation74_spill] sm:$0xff] %v3733_v6  ;;  %4621 = vst [vmem:[#allocation75_spill] sm:$0xff] %v3735_v23  ;;  %v3737_v21 = vadd.f32 %v584_v22, %v349_v26  ;;  %v3739_v20 = vadd.f32 %v637_v24, %v357_v29  ;;  %v624_v22 = vadd.f32 %v623_v7, %v357_v29 }
 0x109   : > { %v622_v24 = vadd.f32 %v621_v32, %v353_v36  ;;  %v4624_v32 = vmov 0  }
 0x10a   : > { %4622 = vst [vmem:[#allocation76_spill] sm:$0xff] %v3737_v21  ;;  %4623 = vst [vmem:[#allocation77_spill] sm:$0xff] %v3739_v20 }
 0x119   : > { %v915_v31 = vpop.f32.mrf.mxu0  ;;  %v956_v19 = vpop.f32.mrf.mxu1 }
 0x11a   : > { %v963_v18 = vadd.f32 %v915_v31, %v569_v37  ;;  %v965_v47 = vadd.f32 %v956_v19, %v622_v24  ;;  %v681_v31 = vld [vmem:[#allocation3 + $0x8] sm:$0xff]  ;;  %v4647_v37 = vld [vmem:[#allocation30_spill] sm:$0xff] }
 0x11b   : > { %v917_v4 = vpop.f32.mrf.mxu0  ;;  %v958_v17 = vpop.f32.mrf.mxu1  ;;  %v4653_v24 = vld [vmem:[#allocation36_spill] sm:$0xff] }
 0x11c   : > { %v2362_v28 = vmul.f32 -1.442695, %v963_v18  ;;  %v964_v25 = vadd.f32 %v917_v4, %v571_v34  ;;  %v966_v21 = vadd.f32 %v958_v17, %v624_v22  ;;  %v4648_v18 = vld [vmem:[#allocation31_spill] sm:$0xff]  ;;  %v4649_v17 = vld [vmem:[#allocation32_spill] sm:$0xff] }
 0x11d   : > { %v919_v16 = vpop.f32.mrf.mxu0  ;;  %v960_v27 = vpop.f32.mrf.mxu1  ;;  %v4652_v22 = vld [vmem:[#allocation35_spill] sm:$0xff] }
 0x11e   : > { %2713 = vpow2.f32 %v2362_v28  ;;  %v2363_v33 = vmul.f32 -1.442695, %v964_v25  ;;  %v2364_v20 = vmul.f32 -1.442695, %v966_v21  ;;  %v4650_v27 = vld [vmem:[#allocation33_spill] sm:$0xff] }
 0x11f   : > { %v920_v23 = vpop.f32.mrf.mxu0  ;;  %v961_v6 = vpop.f32.mrf.mxu1 }
 0x120   : > { %2715 = vpow2.f32 %v2363_v33  ;;  %v4645_v23 = vld [vmem:[#allocation28_spill] sm:$0xff]  ;;  %v4651_v33 = vld [vmem:[#allocation34_spill] sm:$0xff] }
 0x121   : > { %2717 = vpow2.f32 %v2364_v20  ;;  %v4646_v20 = vld [vmem:[#allocation29_spill] sm:$0xff] }
 0x12b   : > { %v2714_v30 = vpop.eup %2713 }
 0x12c   : > { %v970_v15 = vadd.f32 1.0, %v2714_v30  ;;  %v4654_v30 = vld [vmem:[#allocation37_spill] sm:$0xff] }
 0x12d   : > { %v2716_v35 = vpop.eup %2715 }
 0x12e   : > { %2719 = vrcp.f32 %v970_v15  ;;  %v976_v26 = vadd.f32 1.0, %v2716_v35  ;;  %v2718_v4 = vpop.eup %2717  ;;  %v4656_v35 = vld [vmem:[#allocation39_spill] sm:$0xff] }
 0x12f   : > { %2721 = vtanh.f32 %v965_v47  ;;  %v983_v6 = vadd.f32 1.0, %v2718_v4  ;;  %v4655_v47 = vld [vmem:[#allocation38_spill] sm:$0xff]  ;;  %v4658_v4 = vld [vmem:[#allocation41_spill] sm:$0xff] }
 0x130   : > { %2723 = vrcp.f32 %v976_v26  ;;  %v4657_v26 = vld [vmem:[#allocation40_spill] sm:$0xff] }
 0x131   : > { %2725 = vrcp.f32 %v983_v6  ;;  %v4663_v6 = vld [vmem:[#allocation46_spill] sm:$0xff] }
 0x13b   : > { %v2720_v16 = vpop.eup %2719 }
 0x13c   : > { %v2722_v25 = vpop.eup %2721 }
 0x13d   : > { %v2724_v34 = vpop.eup %2723  ;;  %v987_v28 = vmul.f32 %v2722_v25, %v2720_v16  ;;  %v4659_v16 = vld [vmem:[#allocation42_spill] sm:$0xff]  ;;  %v4661_v25 = vld [vmem:[#allocation44_spill] sm:$0xff] }
 0x13e   : > { %v986_v29 = vmul.f32 %v2724_v34, %v681_v31  ;;  %v2726_v36 = vpop.eup %2725  ;;  %v4660_v31 = vld [vmem:[#allocation43_spill] sm:$0xff]  ;;  %v4662_v34 = vld [vmem:[#allocation45_spill] sm:$0xff] }
 0x140   : > { %v3741_v7 = vadd.f32 %v987_v28, %v986_v29  ;;  %v4664_v28 = vld [vmem:[#allocation47_spill] sm:$0xff]  ;;  %v4665_v29 = vld [vmem:[#allocation48_spill] sm:$0xff] }
 0x142   : > { %2727 = vtanh.f32 %v3741_v7 }
 0x14f   : > { %v2728_v19 = vpop.eup %2727 }
 0x150   : > { %v990_v21 = vmul.f32 %v2728_v19, %v2726_v36  ;;  %v4666_v36 = vld [vmem:[#allocation49_spill] sm:$0xff]  ;;  %v4667_v19 = vld [vmem:[#allocation50_spill] sm:$0xff] }
 0x152   : > { %v991_v15 = vpack.c.bf16 %v990_v21, %v990_v21  ;;  %v4668_v21 = vld [vmem:[#allocation51_spill] sm:$0xff] }
 0x154   : > { %1410 = vmatmul.mubr.bf16.vlgmr.msra.gmra.mxu0 %v991_v15  ;;  %1451 = vmatmul.mubr.bf16.vlgmr.msra.gmra.mxu1 %v991_v15 }
 0x155   : > { %1489 = vmatpush1.bf16.msra.mxu0 %v3130_v38  ;;  %1530 = vmatpush1.bf16.msra.mxu1 %v3135_v39  ;;  %v4625_v38 = vld [vmem:[#allocation8_spill] sm:$0xff]  ;;  %v4626_v39 = vld [vmem:[#allocation9_spill] sm:$0xff] }
 0x156   : > { %1490 = vmatprep.subr.bf16.mxu0 %v3140_v40  ;;  %1531 = vmatprep.subr.bf16.mxu1 %v3147_v41  ;;  %v4627_v40 = vld [vmem:[#allocation10_spill] sm:$0xff]  ;;  %v4628_v41 = vld [vmem:[#allocation11_spill] sm:$0xff] }
 0x157   : > { %1520 = vmatprep.mubr.bf16.mxu0 %v4624_v32  ;;  %1561 = vmatprep.mubr.bf16.mxu1 %v4624_v32 }
 0x159   : > { %1491 = vmatpush1.bf16.msra.mxu0 %v3152_v42  ;;  %1532 = vmatpush1.bf16.msra.mxu1 %v3157_v43  ;;  %v4629_v42 = vld [vmem:[#allocation12_spill] sm:$0xff]  ;;  %v4630_v43 = vld [vmem:[#allocation13_spill] sm:$0xff] }
 0x15a   : > { %1492 = vmatprep.subr.bf16.mxu0 %v3164_v44  ;;  %1533 = vmatprep.subr.bf16.mxu1 %v3171_v45  ;;  %v4631_v44 = vld [vmem:[#allocation14_spill] sm:$0xff]  ;;  %v4632_v45 = vld [vmem:[#allocation15_spill] sm:$0xff] }
 0x15d   : > { %1493 = vmatpush1.bf16.msra.mxu0 %v3176_v46  ;;  %1534 = vmatpush1.bf16.msra.mxu1 %v3186_v48  ;;  %v4633_v46 = vld [vmem:[#allocation16_spill] sm:$0xff]  ;;  %v4634_v48 = vld [vmem:[#allocation17_spill] sm:$0xff] }
 0x15e   : > { %1494 = vmatprep.subr.bf16.mxu0 %v3193_v49  ;;  %1535 = vmatprep.subr.bf16.mxu1 %v3198_v50  ;;  %v4635_v49 = vld [vmem:[#allocation18_spill] sm:$0xff]  ;;  %v4636_v50 = vld [vmem:[#allocation19_spill] sm:$0xff] }
 0x161   : > { %1495 = vmatpush1.bf16.msra.mxu0 %v3205_v51  ;;  %1536 = vmatpush1.bf16.msra.mxu1 %v3210_v52  ;;  %v4637_v51 = vld [vmem:[#allocation20_spill] sm:$0xff]  ;;  %v4638_v52 = vld [vmem:[#allocation21_spill] sm:$0xff] }
 0x162   : > { %1496 = vmatprep.subr.bf16.mxu0 %v3215_v53  ;;  %1537 = vmatprep.subr.bf16.mxu1 %v3222_v54  ;;  %v4639_v53 = vld [vmem:[#allocation22_spill] sm:$0xff]  ;;  %v4640_v54 = vld [vmem:[#allocation23_spill] sm:$0xff] }
 0x165   : > { %1497 = vmatpush1.bf16.msra.mxu0 %v3227_v55  ;;  %1538 = vmatpush1.bf16.msra.mxu1 %v3232_v56  ;;  %v4641_v55 = vld [vmem:[#allocation24_spill] sm:$0xff]  ;;  %v4642_v56 = vld [vmem:[#allocation25_spill] sm:$0xff] }
 0x166   : > { %1498 = vmatprep.subr.bf16.mxu0 %v3239_v57  ;;  %1539 = vmatprep.subr.bf16.mxu1 %v3244_v58  ;;  %v4643_v57 = vld [vmem:[#allocation26_spill] sm:$0xff]  ;;  %v4644_v58 = vld [vmem:[#allocation27_spill] sm:$0xff] }
 0x169   : > { %1499 = vmatpush1.bf16.msra.mxu0 %v3253_v59  ;;  %1540 = vmatpush1.bf16.msra.mxu1 %v3258_v60 }
 0x16a   : > { %1500 = vmatprep.subr.bf16.mxu0 %v3263_v61  ;;  %1541 = vmatprep.subr.bf16.mxu1 %v3268_v62 }
 0x16d   : > { %1501 = vmatpush1.bf16.msra.mxu0 %v3277_v63  ;;  %1542 = vmatpush1.bf16.msra.mxu1 %v3282_v0 }
 0x16e   : > { %1502 = vmatprep.subr.bf16.mxu0 %v3287_v1  ;;  %1543 = vmatprep.subr.bf16.mxu1 %v3292_v2 }
 0x171   : > { %1503 = vmatpush1.bf16.msra.mxu0 %v3301_v3  ;;  %1544 = vmatpush1.bf16.msra.mxu1 %v3306_v5 }
 0x172   : > { %1600 = vmatprep.subr.bf16.mxu0 %v3317_v8  ;;  %1641 = vmatprep.subr.bf16.mxu1 %v3322_v9 }
 0x174   : > { %1521 = vmatmul.mubr.bf16.vlgmr.msra.gmra.mxu0 %v991_v15  ;;  %1562 = vmatmul.mubr.bf16.vlgmr.msra.gmra.mxu1 %v991_v15  ;;  %v4669_v15 = vld [vmem:[#allocation52_spill] sm:$0xff] }
 0x175   : > { %1601 = vmatpush1.bf16.msra.mxu0 %v3327_v10  ;;  %1642 = vmatpush1.bf16.msra.mxu1 %v3332_v11 }
 0x176   : > { %1602 = vmatprep.subr.bf16.mxu0 %v3337_v12  ;;  %1643 = vmatprep.subr.bf16.mxu1 %v3342_v13 }
 0x179   : > { %1603 = vmatpush1.bf16.msra.mxu0 %v3351_v14  ;;  %1644 = vmatpush1.bf16.msra.mxu1 %v4625_v38 }
 0x17a   : > { %1604 = vmatprep.subr.bf16.mxu0 %v4626_v39  ;;  %1645 = vmatprep.subr.bf16.mxu1 %v4627_v40 }
 0x17d   : > { %1605 = vmatpush1.bf16.msra.mxu0 %v4628_v41  ;;  %1646 = vmatpush1.bf16.msra.mxu1 %v4629_v42 }
 0x17e   : > { %1606 = vmatprep.subr.bf16.mxu0 %v4630_v43  ;;  %1647 = vmatprep.subr.bf16.mxu1 %v4631_v44 }
 0x181   : > { %1607 = vmatpush1.bf16.msra.mxu0 %v4632_v45  ;;  %1648 = vmatpush1.bf16.msra.mxu1 %v4633_v46 }
 0x182   : > { %1608 = vmatprep.subr.bf16.mxu0 %v4634_v48  ;;  %1649 = vmatprep.subr.bf16.mxu1 %v4635_v49 }
 0x185   : > { %1609 = vmatpush1.bf16.msra.mxu0 %v4636_v50  ;;  %1650 = vmatpush1.bf16.msra.mxu1 %v4637_v51 }
 0x186   : > { %1610 = vmatprep.subr.bf16.mxu0 %v4638_v52  ;;  %1651 = vmatprep.subr.bf16.mxu1 %v4639_v53 }
 0x189   : > { %1611 = vmatpush1.bf16.msra.mxu0 %v4640_v54  ;;  %1652 = vmatpush1.bf16.msra.mxu1 %v4641_v55 }
 0x18a   : > { %1612 = vmatprep.subr.bf16.mxu0 %v4642_v56  ;;  %1653 = vmatprep.subr.bf16.mxu1 %v4643_v57 }
 0x18d   : > { %1613 = vmatpush1.bf16.msra.mxu0 %v4644_v58  ;;  %1654 = vmatpush1.bf16.msra.mxu1 %v4645_v23 }
 0x18e   : > { %1614 = vmatprep.subr.bf16.mxu0 %v4646_v20  ;;  %1655 = vmatprep.subr.bf16.mxu1 %v4647_v37  ;;  %v4696_v37 = vld [vmem:[#allocation67_spill] sm:$0xff] }
 0x191   : > { %1615 = vmatpush1.bf16.msra.mxu0 %v4648_v18  ;;  %1656 = vmatpush1.bf16.msra.mxu1 %v4649_v17 }
 0x192   : > { %1616 = vmatprep.subr.bf16.mxu0 %v4650_v27  ;;  %1657 = vmatprep.subr.bf16.mxu1 %v4651_v33 }
 0x195   : > { %1617 = vmatpush2.bf16.msra.mxu0 %v4652_v22  ;;  %1658 = vmatpush2.bf16.msra.mxu1 %v4653_v24 }
 0x196   : > { %1618 = vmatprep.subr.bf16.mxu0 %v4654_v30  ;;  %1659 = vmatprep.subr.bf16.mxu1 %v4655_v47 }
 0x199   : > { %1619 = vmatpush2.bf16.msra.mxu0 %v4656_v35  ;;  %1660 = vmatpush2.bf16.msra.mxu1 %v4657_v26 }
 0x19a   : > { %1620 = vmatprep.subr.bf16.mxu0 %v4658_v4  ;;  %1661 = vmatprep.subr.bf16.mxu1 %v4659_v16  ;;  %v4670_v16 = vld [vmem:[#allocation53_spill] sm:$0xff] }
 0x19d   : > { %1621 = vmatpush2.bf16.msra.mxu0 %v4660_v31  ;;  %1662 = vmatpush2.bf16.msra.mxu1 %v4661_v25  ;;  %v4671_v31 = vld [vmem:[#allocation54_spill] sm:$0xff]  ;;  %v4672_v25 = vld [vmem:[#allocation55_spill] sm:$0xff] }
 0x19e   : > { %1622 = vmatprep.subr.bf16.mxu0 %v4662_v34  ;;  %1663 = vmatprep.subr.bf16.mxu1 %v4663_v6  ;;  %v4673_v34 = vld [vmem:[#allocation56_spill] sm:$0xff]  ;;  %v4674_v6 = vld [vmem:[#allocation57_spill] sm:$0xff] }
 0x1a1   : > { %1623 = vmatpush2.bf16.msra.mxu0 %v4664_v28  ;;  %1664 = vmatpush2.bf16.msra.mxu1 %v4665_v29  ;;  %v4675_v28 = vld [vmem:[#allocation58_spill] sm:$0xff]  ;;  %v4676_v29 = vld [vmem:[#allocation59_spill] sm:$0xff] }
 0x1a2   : > { %1624 = vmatprep.subr.bf16.mxu0 %v4666_v36  ;;  %1665 = vmatprep.subr.bf16.mxu1 %v4667_v19  ;;  %v4677_v36 = vld [vmem:[#allocation60_spill] sm:$0xff]  ;;  %v4678_v19 = vld [vmem:[#allocation61_spill] sm:$0xff] }
 0x1a5   : > { %1625 = vmatpush2.bf16.msra.mxu0 %v4668_v21  ;;  %1666 = vmatpush2.bf16.msra.mxu1 %v4669_v15  ;;  %v4679_v21 = vld [vmem:[#allocation62_spill] sm:$0xff]  ;;  %v4680_v15 = vld [vmem:[#allocation63_spill] sm:$0xff] }
 0x1a6   : > { %1626 = vmatprep.subr.bf16.mxu0 %v4670_v16  ;;  %1667 = vmatprep.subr.bf16.mxu1 %v4671_v31  ;;  %v4681_v16 = vld [vmem:[#allocation64_spill] sm:$0xff]  ;;  %v4682_v31 = vld [vmem:[#allocation6_spill] sm:$0xff] }
 0x1a9   : > { %1627 = vmatpush2.bf16.msra.mxu0 %v4672_v25  ;;  %1668 = vmatpush2.bf16.msra.mxu1 %v4673_v34  ;;  %v4683_v25 = vld [vmem:[#allocation7_spill] sm:$0xff] }
 0x1aa   : > { %1628 = vmatprep.subr.bf16.mxu0 %v4674_v6  ;;  %1669 = vmatprep.subr.bf16.mxu1 %v4675_v28  ;;  %v656_v28 = vld [vmem:[%s4416_s5] sm:$0xf] }
 0x1ab   : > { %v4684_v6 = vld [vmem:[#allocation65_spill] sm:$0xff] }
 0x1ac   : > { %v4689_v22 = vsub.s32 3, %v4684_v6 }
 0x1ad   : > { %1629 = vmatpush2.bf16.msra.mxu0 %v4676_v29  ;;  %1670 = vmatpush2.bf16.msra.mxu1 %v4677_v36  ;;  %v4685_v29 = vsub.s32 0, %v4684_v6 }
 0x1ae   : > { %1630 = vmatprep.subr.bf16.mxu0 %v4678_v19  ;;  %1671 = vmatprep.subr.bf16.mxu1 %v4679_v21  ;;  %v4687_v19 = vsub.s32 1, %v4684_v6 }
 0x1af   : > { %v3847_v34 = vrot.slane %v656_v28, %v4685_v29 }
 0x1b0   : > { %v3851_v36 = vrot.slane %v656_v28, %v4687_v19  ;;  %v3857_v19 = vrot.slane %v656_v28, %v4689_v22 }
 0x1b1   : > { %1631 = vmatpush2.bf16.msra.mxu0 %v4680_v15  ;;  %1672 = vmatpush2.bf16.msra.mxu1 %v4681_v16  ;;  %4686 = vst [vmem:[#allocation8_spill] sm:$0xff] %v3847_v34 }
 0x1b2   : > { %1711 = vmatprep.subr.bf16.mxu0 %v4682_v31  ;;  %1752 = vmatprep.subr.bf16.mxu1 %v4683_v25  ;;  %4688 = vst [vmem:[#allocation9_spill] sm:$0xff] %v3851_v36  ;;  %4690 = vst [vmem:[#allocation10_spill] sm:$0xff] %v3857_v19 }
 0x214   : > { %v1411_v21 = vpop.f32.mrf.mxu0  ;;  %v1452_v15 = vpop.f32.mrf.mxu1 }
 0x215   : > { %v1412_v16 = vadd.f32 %v1411_v21, %v3847_v34  ;;  %v4691_v21 = vsub.s32 2, %v4684_v6  ;;  %v683_v6 = vld [vmem:[#allocation3] sm:$0xff] }
 0x216   : > { %v1413_v4 = vpop.f32.mrf.mxu0  ;;  %v1454_v31 = vpop.f32.mrf.mxu1 }
 0x217   : > { %v2429_v26 = vmul.f32 -1.442695, %v1412_v16  ;;  %v1414_v25 = vadd.f32 %v1413_v4, %v3851_v36  ;;  %v1455_v33 = vadd.f32 %v1454_v31, %v3857_v19  ;;  %v3862_v34 = vrot.slane %v656_v28, %v4691_v21  ;;  %v4694_v36 = vld [vmem:[#allocation68_spill] sm:$0xff] }
 0x218   : > { %v1415_v35 = vpop.f32.mrf.mxu0  ;;  %v1456_v47 = vpop.f32.mrf.mxu1 }
 0x219   : > { %2729 = vpow2.f32 %v2429_v26  ;;  %v2430_v30 = vmul.f32 -1.442695, %v1414_v25  ;;  %4692 = vst [vmem:[#allocation11_spill] sm:$0xff] %v3862_v34  ;;  %v2431_v16 = vmul.f32 -1.442695, %v1455_v33  ;;  %v1453_v35 = vadd.f32 %v1452_v15, %v3862_v34  ;;  %v4693_v25 = vld [vmem:[#allocation66_spill] sm:$0xff] }
 0x21a   : > { %v1416_v24 = vpop.f32.mrf.mxu0  ;;  %v1457_v29 = vpop.f32.mrf.mxu1 }
 0x21b   : > { %2731 = vpow2.f32 %v2430_v30 }
 0x21c   : > { %2733 = vpow2.f32 %v2431_v16 }
 0x226   : > { %v2730_v27 = vpop.eup %2729 }
 0x227   : > { %v1462_v47 = vadd.f32 1.0, %v2730_v27 }
 0x228   : > { %v2732_v26 = vpop.eup %2731 }
 0x229   : > { %2735 = vrcp.f32 %v1462_v47  ;;  %v1468_v24 = vadd.f32 1.0, %v2732_v26  ;;  %v2734_v4 = vpop.eup %2733 }
 0x22a   : > { %2737 = vtanh.f32 %v1453_v35  ;;  %v1475_v34 = vadd.f32 1.0, %v2734_v4 }
 0x22b   : > { %2739 = vrcp.f32 %v1468_v24 }
 0x234   : > { %v1522_v30 = vpop.f32.mrf.mxu0  ;;  %v1563_v22 = vpop.f32.mrf.mxu1 }
 0x235   : > { %v1570_v31 = vadd.f32 %v1522_v30, %v4693_v25  ;;  %v4695_v25 = vld [vmem:[#allocation69_spill] sm:$0xff] }
 0x236   : > { %v2736_v29 = vpop.eup %2735  ;;  %v1524_v28 = vpop.f32.mrf.mxu0 }
 0x237   : > { %v1565_v21 = vpop.f32.mrf.mxu1  ;;  %v2738_v33 = vpop.eup %2737  ;;  %v2432_v19 = vmul.f32 -1.442695, %v1570_v31  ;;  %v1571_v15 = vadd.f32 %v1524_v28, %v4694_v36  ;;  %v1572_v36 = vadd.f32 %v1563_v22, %v4696_v37 }
 0x238   : > { %v2740_v27 = vpop.eup %2739  ;;  %v1526_v16 = vpop.f32.mrf.mxu0  ;;  %v1479_v26 = vmul.f32 %v2738_v33, %v2736_v29  ;;  %v1573_v31 = vadd.f32 %v1565_v21, %v4695_v25 }
 0x239   : > { %v1567_v47 = vpop.f32.mrf.mxu1  ;;  %v1478_v35 = vmul.f32 %v2740_v27, %v683_v6  ;;  %2741 = vpow2.f32 %v2432_v19  ;;  %v2433_v24 = vmul.f32 -1.442695, %v1571_v15 }
 0x23a   : > { %v1527_v17 = vpop.f32.mrf.mxu0  ;;  %v2434_v28 = vmul.f32 -1.442695, %v1573_v31 }
 0x23b   : > { %v1568_v18 = vpop.f32.mrf.mxu1  ;;  %2743 = vpow2.f32 %v2433_v24  ;;  %v3867_v30 = vadd.f32 %v1479_v26, %v1478_v35 }
 0x23c   : > { %2745 = vrcp.f32 %v1475_v34 }
 0x23d   : > { %2747 = vtanh.f32 %v3867_v30 }
 0x23e   : > { %2749 = vtanh.f32 %v1572_v36  ;;  %v3879_v36 = vld [vmem:[%s4413_s2 + $0xe0] ss:$16 sps:$4 sm:$0xff]  }
 0x23f   : > { %2751 = vpow2.f32 %v2434_v28  ;;  %v3891_v28 = vld [vmem:[%s4413_s2 + $0xc4] ss:$16 sps:$4 sm:$0xff]  }
 0x246   : > { %v2742_v4 = vpop.eup %2741 }
 0x247   : > { %v1577_v16 = vadd.f32 1.0, %v2742_v4  ;;  %v3897_v4 = vld [vmem:[%s4413_s2 + $0xcc] ss:$16 sps:$4 sm:$0xff]  }
 0x248   : > { %v2744_v29 = vpop.eup %2743 }
 0x249   : > { %v2746_v19 = vpop.eup %2745  ;;  %2753 = vrcp.f32 %v1577_v16  ;;  %v1583_v17 = vadd.f32 1.0, %v2744_v29  ;;  %v3905_v16 = vld [vmem:[%s4413_s2 + $0xc0] ss:$16 sps:$4 sm:$0xff]   ;;  %v3911_v29 = vld [vmem:[%s4413_s2 + $0xc8] ss:$16 sps:$4 sm:$0xff]  }
 0x24a   : > { %v2748_v18 = vpop.eup %2747 }
 0x24b   : > { %2755 = vrcp.f32 %v1583_v17  ;;  %v1482_v6 = vmul.f32 %v2748_v18, %v2746_v19  ;;  %v2750_v34 = vpop.eup %2749  ;;  %v3917_v19 = vld [vmem:[%s4413_s2 + $0xa4] ss:$16 sps:$4 sm:$0xff]   ;;  %v3923_v17 = vld [vmem:[%s4413_s2 + $0xac] ss:$16 sps:$4 sm:$0xff]   ;;  %v3929_v18 = vld [vmem:[%s4413_s2 + $0xa0] ss:$16 sps:$4 sm:$0xff]  }
 0x24c   : > { %v2752_v15 = vpop.eup %2751 }
 0x24d   : > { %v1599_v33 = vpack.c.bf16 %v1482_v6, %v1482_v6  ;;  %v1590_v22 = vadd.f32 1.0, %v2752_v15  ;;  %v3935_v6 = vld [vmem:[%s4413_s2 + $0xa8] ss:$16 sps:$4 sm:$0xff]   ;;  %v3953_v15 = vld [vmem:[%s4413_s2 + $0x80] ss:$16 sps:$4 sm:$0xff]  }
 0x24f   : > { %1632 = vmatprep.mubr.bf16.mxu0 %v1599_v33  ;;  %1673 = vmatprep.mubr.bf16.mxu1 %v1599_v33  ;;  %2757 = vrcp.f32 %v1590_v22  ;;  %v3941_v33 = vld [vmem:[%s4413_s2 + $0x84] ss:$16 sps:$4 sm:$0xff]   ;;  %v3977_v22 = vld [vmem:[%s4413_s2 + $0x60] ss:$16 sps:$4 sm:$0xff]  }
 0x256   : > { %v2754_v21 = vpop.eup %2753 }
 0x257   : > { %v1594_v27 = vmul.f32 %v2754_v21, %v2750_v34  ;;  %v3947_v34 = vld [vmem:[%s4413_s2 + $0x8c] ss:$16 sps:$4 sm:$0xff]   ;;  %v3959_v21 = vld [vmem:[%s4413_s2 + $0x88] ss:$16 sps:$4 sm:$0xff]  }
 0x258   : > { %v2756_v37 = vpop.eup %2755 }
 0x259   : > { %v1593_v47 = vmul.f32 %v2756_v37, %v3741_v7  ;;  %v3885_v7 = vld [vmem:[%s4413_s2 + $0xe8] ss:$16 sps:$4 sm:$0xff]   ;;  %v3971_v37 = vld [vmem:[%s4413_s2 + $0x6c] ss:$16 sps:$4 sm:$0xff]  }
 0x25b   : > { %v3873_v26 = vadd.f32 %v1594_v27, %v1593_v47  ;;  %v3965_v27 = vld [vmem:[%s4413_s2 + $0x64] ss:$16 sps:$4 sm:$0xff]   ;;  %v3983_v47 = vld [vmem:[%s4413_s2 + $0x68] ss:$16 sps:$4 sm:$0xff]  }
 0x25c   : > { %v2758_v35 = vpop.eup %2757 }
 0x25d   : > { %2759 = vtanh.f32 %v3873_v26 }
 0x26a   : > { %v2760_v24 = vpop.eup %2759 }
 0x26b   : > { %v1597_v25 = vmul.f32 %v2760_v24, %v2758_v35  ;;  %v3989_v35 = vld [vmem:[%s4413_s2 + $0x44] ss:$16 sps:$4 sm:$0xff]   ;;  %v3995_v24 = vld [vmem:[%s4413_s2 + $0x4c] ss:$16 sps:$4 sm:$0xff]  }
 0x26d   : > { %v1598_v31 = vpack.c.bf16 %v1597_v25, %v1597_v25  ;;  %v4732_v25 = vld [vmem:[#allocation8_spill] sm:$0xff] }
 0x26f   : > { %1633 = vmatmul.mubr.bf16.vlgmr.msra.gmra.mxu0 %v1598_v31  ;;  %1674 = vmatmul.mubr.bf16.vlgmr.msra.gmra.mxu1 %v1598_v31 }
 0x270   : > { %1712 = vmatpush1.bf16.msra.mxu0 %v3879_v36  ;;  %1753 = vmatpush1.bf16.msra.mxu1 %v3885_v7 }
 0x271   : > { %1713 = vmatprep.subr.bf16.mxu0 %v3891_v28  ;;  %1754 = vmatprep.subr.bf16.mxu1 %v3897_v4 }
 0x272   : > { %1743 = vmatprep.mubr.bf16.mxu0 %v4624_v32  ;;  %1784 = vmatprep.mubr.bf16.mxu1 %v4624_v32 }
 0x274   : > { %1714 = vmatpush1.bf16.msra.mxu0 %v3905_v16  ;;  %1755 = vmatpush1.bf16.msra.mxu1 %v3911_v29 }
 0x275   : > { %1715 = vmatprep.subr.bf16.mxu0 %v3917_v19  ;;  %1756 = vmatprep.subr.bf16.mxu1 %v3923_v17 }
 0x278   : > { %1716 = vmatpush1.bf16.msra.mxu0 %v3929_v18  ;;  %1757 = vmatpush1.bf16.msra.mxu1 %v3935_v6 }
 0x279   : > { %1717 = vmatprep.subr.bf16.mxu0 %v3941_v33  ;;  %1758 = vmatprep.subr.bf16.mxu1 %v3947_v34 }
 0x27c   : > { %1718 = vmatpush1.bf16.msra.mxu0 %v3953_v15  ;;  %1759 = vmatpush1.bf16.msra.mxu1 %v3959_v21 }
 0x27d   : > { %1719 = vmatprep.subr.bf16.mxu0 %v3965_v27  ;;  %1760 = vmatprep.subr.bf16.mxu1 %v3971_v37 }
 0x280   : > { %1720 = vmatpush1.bf16.msra.mxu0 %v3977_v22  ;;  %1761 = vmatpush1.bf16.msra.mxu1 %v3983_v47 }
 0x281   : > { %1721 = vmatprep.subr.bf16.mxu0 %v3989_v35  ;;  %1762 = vmatprep.subr.bf16.mxu1 %v3995_v24 }
 0x284   : > { %1722 = vmatpush1.bf16.msra.mxu0 %v3253_v59  ;;  %1763 = vmatpush1.bf16.msra.mxu1 %v3258_v60  ;;  %v4697_v59 = vld [vmem:[#allocation30_spill] sm:$0xff]  ;;  %v4698_v60 = vld [vmem:[#allocation31_spill] sm:$0xff] }
 0x285   : > { %1723 = vmatprep.subr.bf16.mxu0 %v3263_v61  ;;  %1764 = vmatprep.subr.bf16.mxu1 %v3268_v62  ;;  %v4699_v61 = vld [vmem:[#allocation32_spill] sm:$0xff]  ;;  %v4700_v62 = vld [vmem:[#allocation33_spill] sm:$0xff] }
 0x288   : > { %1724 = vmatpush1.bf16.msra.mxu0 %v3277_v63  ;;  %1765 = vmatpush1.bf16.msra.mxu1 %v3282_v0  ;;  %v4701_v63 = vld [vmem:[#allocation34_spill] sm:$0xff]  ;;  %v4702_v0 = vld [vmem:[#allocation35_spill] sm:$0xff] }
 0x289   : > { %1725 = vmatprep.subr.bf16.mxu0 %v3287_v1  ;;  %1766 = vmatprep.subr.bf16.mxu1 %v3292_v2  ;;  %v4703_v1 = vld [vmem:[#allocation36_spill] sm:$0xff]  ;;  %v4704_v2 = vld [vmem:[#allocation37_spill] sm:$0xff] }
 0x28c   : > { %1726 = vmatpush1.bf16.msra.mxu0 %v3301_v3  ;;  %1767 = vmatpush1.bf16.msra.mxu1 %v3306_v5  ;;  %v4705_v3 = vld [vmem:[#allocation38_spill] sm:$0xff]  ;;  %v4706_v5 = vld [vmem:[#allocation39_spill] sm:$0xff] }
 0x28d   : > { %1823 = vmatprep.subr.bf16.mxu0 %v3317_v8  ;;  %1864 = vmatprep.subr.bf16.mxu1 %v3322_v9  ;;  %v4707_v8 = vld [vmem:[#allocation40_spill] sm:$0xff]  ;;  %v4708_v9 = vld [vmem:[#allocation41_spill] sm:$0xff] }
 0x28f   : > { %1744 = vmatmul.mubr.bf16.vlgmr.msra.gmra.mxu0 %v1598_v31  ;;  %1785 = vmatmul.mubr.bf16.vlgmr.msra.gmra.mxu1 %v1598_v31 }
 0x290   : > { %1824 = vmatpush1.bf16.msra.mxu0 %v3327_v10  ;;  %1865 = vmatpush1.bf16.msra.mxu1 %v3332_v11  ;;  %v4709_v10 = vld [vmem:[#allocation42_spill] sm:$0xff]  ;;  %v4710_v11 = vld [vmem:[#allocation43_spill] sm:$0xff] }
 0x291   : > { %1825 = vmatprep.subr.bf16.mxu0 %v3337_v12  ;;  %1866 = vmatprep.subr.bf16.mxu1 %v3342_v13  ;;  %v4711_v12 = vld [vmem:[#allocation44_spill] sm:$0xff]  ;;  %v4712_v13 = vld [vmem:[#allocation45_spill] sm:$0xff] }
 0x294   : > { %1826 = vmatpush1.bf16.msra.mxu0 %v3351_v14  ;;  %1867 = vmatpush1.bf16.msra.mxu1 %v4625_v38  ;;  %v4713_v14 = vld [vmem:[#allocation46_spill] sm:$0xff]  ;;  %v4714_v38 = vld [vmem:[#allocation47_spill] sm:$0xff] }
 0x295   : > { %1827 = vmatprep.subr.bf16.mxu0 %v4626_v39  ;;  %1868 = vmatprep.subr.bf16.mxu1 %v4627_v40  ;;  %v4715_v39 = vld [vmem:[#allocation48_spill] sm:$0xff]  ;;  %v4716_v40 = vld [vmem:[#allocation49_spill] sm:$0xff] }
 0x298   : > { %1828 = vmatpush1.bf16.msra.mxu0 %v4628_v41  ;;  %1869 = vmatpush1.bf16.msra.mxu1 %v4629_v42  ;;  %v4717_v41 = vld [vmem:[#allocation50_spill] sm:$0xff]  ;;  %v4718_v42 = vld [vmem:[#allocation51_spill] sm:$0xff] }
 0x299   : > { %1829 = vmatprep.subr.bf16.mxu0 %v4630_v43  ;;  %1870 = vmatprep.subr.bf16.mxu1 %v4631_v44  ;;  %v4719_v43 = vld [vmem:[#allocation52_spill] sm:$0xff]  ;;  %v4720_v44 = vld [vmem:[#allocation53_spill] sm:$0xff] }
 0x29c   : > { %1830 = vmatpush1.bf16.msra.mxu0 %v4632_v45  ;;  %1871 = vmatpush1.bf16.msra.mxu1 %v4633_v46  ;;  %v4721_v45 = vld [vmem:[#allocation54_spill] sm:$0xff]  ;;  %v4722_v46 = vld [vmem:[#allocation55_spill] sm:$0xff] }
 0x29d   : > { %1831 = vmatprep.subr.bf16.mxu0 %v4634_v48  ;;  %1872 = vmatprep.subr.bf16.mxu1 %v4635_v49  ;;  %v4723_v48 = vld [vmem:[#allocation56_spill] sm:$0xff]  ;;  %v4724_v49 = vld [vmem:[#allocation57_spill] sm:$0xff] }
 0x2a0   : > { %1832 = vmatpush1.bf16.msra.mxu0 %v4636_v50  ;;  %1873 = vmatpush1.bf16.msra.mxu1 %v4637_v51  ;;  %v4725_v50 = vld [vmem:[#allocation58_spill] sm:$0xff]  ;;  %v4726_v51 = vld [vmem:[#allocation59_spill] sm:$0xff] }
 0x2a1   : > { %1833 = vmatprep.subr.bf16.mxu0 %v4638_v52  ;;  %1874 = vmatprep.subr.bf16.mxu1 %v4639_v53  ;;  %v4727_v52 = vld [vmem:[#allocation60_spill] sm:$0xff]  ;;  %v4728_v53 = vld [vmem:[#allocation61_spill] sm:$0xff] }
 0x2a4   : > { %1834 = vmatpush1.bf16.msra.mxu0 %v4640_v54  ;;  %1875 = vmatpush1.bf16.msra.mxu1 %v4641_v55  ;;  %v4729_v54 = vld [vmem:[#allocation62_spill] sm:$0xff]  ;;  %v4730_v55 = vld [vmem:[#allocation63_spill] sm:$0xff] }
 0x2a5   : > { %1835 = vmatprep.subr.bf16.mxu0 %v4642_v56  ;;  %1876 = vmatprep.subr.bf16.mxu1 %v4643_v57  ;;  %v4731_v56 = vld [vmem:[#allocation64_spill] sm:$0xff] }
 0x2a6   : > { %v2861_v57 = vld [vmem:[%s4413_s2 + $0xe4] ss:$16 sps:$4 sm:$0xff]  }
 0x2a8   : > { %1836 = vmatpush1.bf16.msra.mxu0 %v4644_v58  ;;  %1877 = vmatpush1.bf16.msra.mxu1 %v4645_v23  ;;  %v2862_v58 = vld [vmem:[%s4413_s2 + $0xec] ss:$16 sps:$4 sm:$0xff]  }
 0x2a9   : > { %1837 = vmatprep.subr.bf16.mxu0 %v4646_v20  ;;  %1878 = vmatprep.subr.bf16.mxu1 %v4697_v59 }
 0x2ac   : > { %1838 = vmatpush1.bf16.msra.mxu0 %v4698_v60  ;;  %1879 = vmatpush1.bf16.msra.mxu1 %v4699_v61 }
 0x2ad   : > { %1839 = vmatprep.subr.bf16.mxu0 %v4700_v62  ;;  %1880 = vmatprep.subr.bf16.mxu1 %v4701_v63  ;;  %v4733_v62 = vld [vmem:[#allocation9_spill] sm:$0xff] }
 0x2b0   : > { %1840 = vmatpush2.bf16.msra.mxu0 %v4702_v0  ;;  %1881 = vmatpush2.bf16.msra.mxu1 %v4703_v1 }
 0x2b1   : > { %1841 = vmatprep.subr.bf16.mxu0 %v4704_v2  ;;  %1882 = vmatprep.subr.bf16.mxu1 %v4705_v3 }
 0x2b4   : > { %1842 = vmatpush2.bf16.msra.mxu0 %v4706_v5  ;;  %1883 = vmatpush2.bf16.msra.mxu1 %v4707_v8  ;;  %v4734_v8 = vld [vmem:[#allocation10_spill] sm:$0xff] }
 0x2b5   : > { %1843 = vmatprep.subr.bf16.mxu0 %v4708_v9  ;;  %1884 = vmatprep.subr.bf16.mxu1 %v4709_v10 }
 0x2b8   : > { %1844 = vmatpush2.bf16.msra.mxu0 %v4710_v11  ;;  %1885 = vmatpush2.bf16.msra.mxu1 %v4711_v12  ;;  %v4735_v12 = vld [vmem:[#allocation11_spill] sm:$0xff] }
 0x2b9   : > { %1845 = vmatprep.subr.bf16.mxu0 %v4712_v13  ;;  %1886 = vmatprep.subr.bf16.mxu1 %v4713_v14 }
 0x2bc   : > { %1846 = vmatpush2.bf16.msra.mxu0 %v4714_v38  ;;  %1887 = vmatpush2.bf16.msra.mxu1 %v4715_v39 }
 0x2bd   : > { %1847 = vmatprep.subr.bf16.mxu0 %v4716_v40  ;;  %1888 = vmatprep.subr.bf16.mxu1 %v4717_v41 }
 0x2c0   : > { %1848 = vmatpush2.bf16.msra.mxu0 %v4718_v42  ;;  %1889 = vmatpush2.bf16.msra.mxu1 %v4719_v43  ;;  %v4736_v43 = vld [vmem:[#allocation70_spill] sm:$0xff] }
 0x2c1   : > { %1849 = vmatprep.subr.bf16.mxu0 %v4720_v44  ;;  %1890 = vmatprep.subr.bf16.mxu1 %v4721_v45 }
 0x2c4   : > { %1850 = vmatpush2.bf16.msra.mxu0 %v4722_v46  ;;  %1891 = vmatpush2.bf16.msra.mxu1 %v4723_v48 }
 0x2c5   : > { %1851 = vmatprep.subr.bf16.mxu0 %v4724_v49  ;;  %1892 = vmatprep.subr.bf16.mxu1 %v4725_v50 }
 0x2c8   : > { %1852 = vmatpush2.bf16.msra.mxu0 %v4726_v51  ;;  %1893 = vmatpush2.bf16.msra.mxu1 %v4727_v52  ;;  %v4737_v51 = vld [vmem:[#allocation72_spill] sm:$0xff] }
 0x2c9   : > { %1853 = vmatprep.subr.bf16.mxu0 %v4728_v53  ;;  %1894 = vmatprep.subr.bf16.mxu1 %v4729_v54 }
 0x2cc   : > { %1854 = vmatpush2.bf16.msra.mxu0 %v4730_v55  ;;  %1895 = vmatpush2.bf16.msra.mxu1 %v4731_v56 }
 0x2cd   : > { %1934 = vmatprep.subr.bf16.mxu0 %v2861_v57  ;;  %1975 = vmatprep.subr.bf16.mxu1 %v2862_v58 }
 0x32f   : > { %v1634_v23 = vpop.f32.mrf.mxu0  ;;  %v1675_v20 = vpop.f32.mrf.mxu1 }
 0x330   : > { %v1635_v31 = vadd.f32 %v1634_v23, %v4732_v25  ;;  %v1676_v13 = vadd.f32 %v1675_v20, %v4735_v12 }
 0x331   : > { %v1636_v59 = vpop.f32.mrf.mxu0  ;;  %v1677_v60 = vpop.f32.mrf.mxu1 }
 0x332   : > { %v2435_v61 = vmul.f32 -1.442695, %v1635_v31  ;;  %v1637_v63 = vadd.f32 %v1636_v59, %v4733_v62  ;;  %v1678_v9 = vadd.f32 %v1677_v60, %v4734_v8  ;;  %v4738_v60 = vld [vmem:[#allocation73_spill] sm:$0xff] }
 0x333   : > { %v1638_v0 = vpop.f32.mrf.mxu0  ;;  %v1679_v1 = vpop.f32.mrf.mxu1 }
 0x334   : > { %2761 = vpow2.f32 %v2435_v61  ;;  %v2436_v2 = vmul.f32 -1.442695, %v1637_v63  ;;  %v2437_v10 = vmul.f32 -1.442695, %v1678_v9  ;;  %v4739_v63 = vld [vmem:[#allocation71_spill] sm:$0xff] }
 0x335   : > { %v1639_v3 = vpop.f32.mrf.mxu0  ;;  %v1680_v5 = vpop.f32.mrf.mxu1 }
 0x336   : > { %2763 = vpow2.f32 %v2436_v2 }
 0x337   : > { %2765 = vpow2.f32 %v2437_v10 }
 0x341   : > { %v2762_v11 = vpop.eup %2761 }
 0x342   : > { %v1685_v14 = vadd.f32 1.0, %v2762_v11 }
 0x343   : > { %v2764_v38 = vpop.eup %2763 }
 0x344   : > { %2767 = vrcp.f32 %v1685_v14  ;;  %v1691_v39 = vadd.f32 1.0, %v2764_v38  ;;  %v2766_v42 = vpop.eup %2765 }
 0x345   : > { %2769 = vtanh.f32 %v1676_v13  ;;  %v1698_v54 = vadd.f32 1.0, %v2766_v42 }
 0x346   : > { %2771 = vrcp.f32 %v1691_v39 }
 0x34f   : > { %v1745_v40 = vpop.f32.mrf.mxu0  ;;  %v1786_v41 = vpop.f32.mrf.mxu1 }
 0x350   : > { %v1793_v44 = vadd.f32 %v1745_v40, %v4736_v43  ;;  %v1795_v0 = vadd.f32 %v1786_v41, %v4739_v63  ;;  %v2899_v63 = vld [vmem:[%s4414_s3 + $0x20] ss:$16 sps:$4 sm:$0xff]  }
 0x351   : > { %v2768_v45 = vpop.eup %2767  ;;  %v1747_v46 = vpop.f32.mrf.mxu0 }
 0x352   : > { %v1788_v48 = vpop.f32.mrf.mxu1  ;;  %v2770_v49 = vpop.eup %2769  ;;  %v2438_v50 = vmul.f32 -1.442695, %v1793_v44  ;;  %v1794_v52 = vadd.f32 %v1747_v46, %v4737_v51  ;;  %v2886_v51 = vld [vmem:[%s4414_s3 + $0x8c] ss:$16 sps:$4 sm:$0xff]  }
 0x353   : > { %v2772_v53 = vpop.eup %2771  ;;  %v1749_v55 = vpop.f32.mrf.mxu0  ;;  %v1702_v57 = vmul.f32 %v2770_v49, %v2768_v45  ;;  %v1796_v61 = vadd.f32 %v1788_v48, %v4738_v60  ;;  %v2897_v60 = vld [vmem:[%s4414_s3 + $0x24] ss:$16 sps:$4 sm:$0xff]  }
 0x354   : > { %v1790_v56 = vpop.f32.mrf.mxu1  ;;  %v1701_v58 = vmul.f32 %v2772_v53, %v3867_v30  ;;  %2773 = vpow2.f32 %v2438_v50  ;;  %v2439_v23 = vmul.f32 -1.442695, %v1794_v52  ;;  %v2885_v50 = vld [vmem:[%s4414_s3 + $0x84] ss:$16 sps:$4 sm:$0xff]   ;;  %v2887_v52 = vld [vmem:[%s4414_s3 + $0x80] ss:$16 sps:$4 sm:$0xff]  }
 0x355   : > { %v1750_v20 = vpop.f32.mrf.mxu0  ;;  %v2440_v1 = vmul.f32 -1.442695, %v1796_v61  ;;  %v2888_v53 = vld [vmem:[%s4414_s3 + $0x88] ss:$16 sps:$4 sm:$0xff]   ;;  %v2890_v55 = vld [vmem:[%s4414_s3 + $0x6c] ss:$16 sps:$4 sm:$0xff]  }
 0x356   : > { %v1791_v31 = vpop.f32.mrf.mxu1  ;;  %2775 = vpow2.f32 %v2439_v23  ;;  %v4085_v59 = vadd.f32 %v1702_v57, %v1701_v58  ;;  %v2891_v56 = vld [vmem:[%s4414_s3 + $0x60] ss:$16 sps:$4 sm:$0xff]   ;;  %v2892_v57 = vld [vmem:[%s4414_s3 + $0x68] ss:$16 sps:$4 sm:$0xff]   ;;  %v2893_v58 = vld [vmem:[%s4414_s3 + $0x44] ss:$16 sps:$4 sm:$0xff]  }
 0x357   : > { %2777 = vrcp.f32 %v1698_v54  ;;  %v2889_v54 = vld [vmem:[%s4414_s3 + $0x64] ss:$16 sps:$4 sm:$0xff]   ;;  %v2894_v23 = vld [vmem:[%s4414_s3 + $0x4c] ss:$16 sps:$4 sm:$0xff]   ;;  %v2895_v20 = vld [vmem:[%s4414_s3 + $0x40] ss:$16 sps:$4 sm:$0xff]  }
 0x358   : > { %2779 = vtanh.f32 %v4085_v59  ;;  %v2896_v31 = vld [vmem:[%s4414_s3 + $0x48] ss:$16 sps:$4 sm:$0xff]   ;;  %v2898_v61 = vld [vmem:[%s4414_s3 + $0x2c] ss:$16 sps:$4 sm:$0xff]  }
 0x359   : > { %2781 = vtanh.f32 %v1795_v0  ;;  %v2900_v0 = vld [vmem:[%s4414_s3 + $0x28] ss:$16 sps:$4 sm:$0xff]  }
 0x35a   : > { %2783 = vpow2.f32 %v2440_v1  ;;  %v2901_v1 = vld [vmem:[%s4414_s3 + $0x4] ss:$16 sps:$4 sm:$0xff]  }
 0x361   : > { %v2774_v2 = vpop.eup %2773 }
 0x362   : > { %v1800_v3 = vadd.f32 1.0, %v2774_v2  ;;  %v2902_v2 = vld [vmem:[%s4414_s3 + $0xc] ss:$16 sps:$4 sm:$0xff]  }
 0x363   : > { %v2776_v5 = vpop.eup %2775 }
 0x364   : > { %v2778_v30 = vpop.eup %2777  ;;  %2785 = vrcp.f32 %v1800_v3  ;;  %v1806_v9 = vadd.f32 1.0, %v2776_v5  ;;  %v2903_v3 = vld [vmem:[%s4414_s3] ss:$16 sps:$4 sm:$0xff]   ;;  %v2904_v5 = vld [vmem:[%s4414_s3 + $0x8] ss:$16 sps:$4 sm:$0xff]  }
 0x365   : > { %v2780_v10 = vpop.eup %2779 }
 0x366   : > { %2787 = vrcp.f32 %v1806_v9  ;;  %v1705_v11 = vmul.f32 %v2780_v10, %v2778_v30  ;;  %v2782_v14 = vpop.eup %2781  ;;  %v2905_v30 = vld [vmem:[%s4414_s3 + $0x1e4] ss:$16 sps:$4 sm:$0xff]   ;;  %v2906_v9 = vld [vmem:[%s4414_s3 + $0x1ec] ss:$16 sps:$4 sm:$0xff]   ;;  %v2907_v10 = vld [vmem:[%s4414_s3 + $0x1e0] ss:$16 sps:$4 sm:$0xff]  }
 0x367   : > { %v2784_v38 = vpop.eup %2783 }
 0x368   : > { %v1822_v13 = vpack.c.bf16 %v1705_v11, %v1705_v11  ;;  %v1813_v42 = vadd.f32 1.0, %v2784_v38  ;;  %v2908_v11 = vld [vmem:[%s4414_s3 + $0x1e8] ss:$16 sps:$4 sm:$0xff]   ;;  %v2911_v38 = vld [vmem:[%s4414_s3 + $0x1c0] ss:$16 sps:$4 sm:$0xff]  }
 0x36a   : > { %1855 = vmatprep.mubr.bf16.mxu0 %v1822_v13  ;;  %1896 = vmatprep.mubr.bf16.mxu1 %v1822_v13  ;;  %2789 = vrcp.f32 %v1813_v42  ;;  %v2909_v13 = vld [vmem:[%s4414_s3 + $0x1c4] ss:$16 sps:$4 sm:$0xff]   ;;  %v2915_v42 = vld [vmem:[%s4414_s3 + $0x1a0] ss:$16 sps:$4 sm:$0xff]  }
 0x371   : > { %v2786_v39 = vpop.eup %2785 }
 0x372   : > { %v1817_v40 = vmul.f32 %v2786_v39, %v2782_v14  ;;  %v2910_v14 = vld [vmem:[%s4414_s3 + $0x1cc] ss:$16 sps:$4 sm:$0xff]   ;;  %v2912_v39 = vld [vmem:[%s4414_s3 + $0x1c8] ss:$16 sps:$4 sm:$0xff]  }
 0x373   : > { %v2788_v41 = vpop.eup %2787 }
 0x374   : > { %v1816_v43 = vmul.f32 %v2788_v41, %v3873_v26  ;;  %v2864_v26 = vld [vmem:[%s4413_s2 + $0x48] ss:$16 sps:$4 sm:$0xff]   ;;  %v2914_v41 = vld [vmem:[%s4414_s3 + $0x1ac] ss:$16 sps:$4 sm:$0xff]  }
 0x376   : > { %v4091_v44 = vadd.f32 %v1817_v40, %v1816_v43  ;;  %v2913_v40 = vld [vmem:[%s4414_s3 + $0x1a4] ss:$16 sps:$4 sm:$0xff]   ;;  %v2916_v43 = vld [vmem:[%s4414_s3 + $0x1a8] ss:$16 sps:$4 sm:$0xff]  }
 0x377   : > { %v2790_v45 = vpop.eup %2789 }
 0x378   : > { %2791 = vtanh.f32 %v4091_v44 }
 0x385   : > { %v2792_v46 = vpop.eup %2791 }
 0x386   : > { %v1820_v48 = vmul.f32 %v2792_v46, %v2790_v45  ;;  %v2917_v45 = vld [vmem:[%s4414_s3 + $0x184] ss:$16 sps:$4 sm:$0xff]   ;;  %v2918_v46 = vld [vmem:[%s4414_s3 + $0x18c] ss:$16 sps:$4 sm:$0xff]  }
 0x388   : > { %v1821_v49 = vpack.c.bf16 %v1820_v48, %v1820_v48  ;;  %v2919_v48 = vld [vmem:[%s4414_s3 + $0x180] ss:$16 sps:$4 sm:$0xff]  }
 0x38a   : > { %1856 = vmatmul.mubr.bf16.vlgmr.msra.gmra.mxu0 %v1821_v49  ;;  %1897 = vmatmul.mubr.bf16.vlgmr.msra.gmra.mxu1 %v1821_v49 }
 0x38b   : > { %1935 = vmatpush1.bf16.msra.mxu0 %v3879_v36  ;;  %1976 = vmatpush1.bf16.msra.mxu1 %v3885_v7  ;;  %v2865_v36 = vld [vmem:[%s4413_s2 + $0x24] ss:$16 sps:$4 sm:$0xff]   ;;  %v2866_v7 = vld [vmem:[%s4413_s2 + $0x2c] ss:$16 sps:$4 sm:$0xff]  }
 0x38c   : > { %1936 = vmatprep.subr.bf16.mxu0 %v3891_v28  ;;  %1977 = vmatprep.subr.bf16.mxu1 %v3897_v4  ;;  %v2867_v28 = vld [vmem:[%s4413_s2 + $0x20] ss:$16 sps:$4 sm:$0xff]   ;;  %v2868_v4 = vld [vmem:[%s4413_s2 + $0x28] ss:$16 sps:$4 sm:$0xff]  }
 0x38d   : > { %1966 = vmatprep.mubr.bf16.mxu0 %v4624_v32  ;;  %2007 = vmatprep.mubr.bf16.mxu1 %v4624_v32  ;;  %v2863_v32 = vld [vmem:[%s4413_s2 + $0x40] ss:$16 sps:$4 sm:$0xff]  }
 0x38f   : > { %1937 = vmatpush1.bf16.msra.mxu0 %v3905_v16  ;;  %1978 = vmatpush1.bf16.msra.mxu1 %v3911_v29  ;;  %v2869_v16 = vld [vmem:[%s4413_s2 + $0x4] ss:$16 sps:$4 sm:$0xff]   ;;  %v2870_v29 = vld [vmem:[%s4413_s2 + $0xc] ss:$16 sps:$4 sm:$0xff]  }
 0x390   : > { %1938 = vmatprep.subr.bf16.mxu0 %v3917_v19  ;;  %1979 = vmatprep.subr.bf16.mxu1 %v3923_v17  ;;  %v2871_v19 = vld [vmem:[%s4413_s2] ss:$16 sps:$4 sm:$0xff]   ;;  %v2872_v17 = vld [vmem:[%s4413_s2 + $0x8] ss:$16 sps:$4 sm:$0xff]  }
 0x393   : > { %1939 = vmatpush1.bf16.msra.mxu0 %v3929_v18  ;;  %1980 = vmatpush1.bf16.msra.mxu1 %v3935_v6  ;;  %v2873_v18 = vld [vmem:[%s4414_s3 + $0xe4] ss:$16 sps:$4 sm:$0xff]   ;;  %v2874_v6 = vld [vmem:[%s4414_s3 + $0xec] ss:$16 sps:$4 sm:$0xff]  }
 0x394   : > { %1940 = vmatprep.subr.bf16.mxu0 %v3941_v33  ;;  %1981 = vmatprep.subr.bf16.mxu1 %v3947_v34  ;;  %v2875_v33 = vld [vmem:[%s4414_s3 + $0xe0] ss:$16 sps:$4 sm:$0xff]   ;;  %v2876_v34 = vld [vmem:[%s4414_s3 + $0xe8] ss:$16 sps:$4 sm:$0xff]  }
 0x397   : > { %1941 = vmatpush1.bf16.msra.mxu0 %v3953_v15  ;;  %1982 = vmatpush1.bf16.msra.mxu1 %v3959_v21  ;;  %v2877_v15 = vld [vmem:[%s4414_s3 + $0xc4] ss:$16 sps:$4 sm:$0xff]   ;;  %v2878_v21 = vld [vmem:[%s4414_s3 + $0xcc] ss:$16 sps:$4 sm:$0xff]  }
 0x398   : > { %1942 = vmatprep.subr.bf16.mxu0 %v3965_v27  ;;  %1983 = vmatprep.subr.bf16.mxu1 %v3971_v37  ;;  %v2879_v27 = vld [vmem:[%s4414_s3 + $0xc0] ss:$16 sps:$4 sm:$0xff]   ;;  %v2880_v37 = vld [vmem:[%s4414_s3 + $0xc8] ss:$16 sps:$4 sm:$0xff]  }
 0x39b   : > { %1943 = vmatpush1.bf16.msra.mxu0 %v3977_v22  ;;  %1984 = vmatpush1.bf16.msra.mxu1 %v3983_v47  ;;  %v2881_v22 = vld [vmem:[%s4414_s3 + $0xa4] ss:$16 sps:$4 sm:$0xff]   ;;  %v2882_v47 = vld [vmem:[%s4414_s3 + $0xac] ss:$16 sps:$4 sm:$0xff]  }
 0x39c   : > { %1944 = vmatprep.subr.bf16.mxu0 %v3989_v35  ;;  %1985 = vmatprep.subr.bf16.mxu1 %v3995_v24  ;;  %v2883_v35 = vld [vmem:[%s4414_s3 + $0xa0] ss:$16 sps:$4 sm:$0xff]   ;;  %v2884_v24 = vld [vmem:[%s4414_s3 + $0xa8] ss:$16 sps:$4 sm:$0xff]  }
 0x39f   : > { %1945 = vmatpush1.bf16.msra.mxu0 %v2863_v32  ;;  %1986 = vmatpush1.bf16.msra.mxu1 %v2864_v26  ;;  %v2921_v32 = vld [vmem:[%s4414_s3 + $0x164] ss:$16 sps:$4 sm:$0xff]   ;;  %v2922_v26 = vld [vmem:[%s4414_s3 + $0x16c] ss:$16 sps:$4 sm:$0xff]  }
 0x3a0   : > { %1946 = vmatprep.subr.bf16.mxu0 %v2865_v36  ;;  %1987 = vmatprep.subr.bf16.mxu1 %v2866_v7  ;;  %v2923_v36 = vld [vmem:[%s4414_s3 + $0x160] ss:$16 sps:$4 sm:$0xff]   ;;  %v2924_v7 = vld [vmem:[%s4414_s3 + $0x168] ss:$16 sps:$4 sm:$0xff]  }
 0x3a3   : > { %1947 = vmatpush1.bf16.msra.mxu0 %v2867_v28  ;;  %1988 = vmatpush1.bf16.msra.mxu1 %v2868_v4  ;;  %v2925_v28 = vld [vmem:[%s4414_s3 + $0x144] ss:$16 sps:$4 sm:$0xff]   ;;  %v2926_v4 = vld [vmem:[%s4414_s3 + $0x14c] ss:$16 sps:$4 sm:$0xff]  }
 0x3a4   : > { %1948 = vmatprep.subr.bf16.mxu0 %v2869_v16  ;;  %1989 = vmatprep.subr.bf16.mxu1 %v2870_v29  ;;  %v2927_v16 = vld [vmem:[%s4414_s3 + $0x140] ss:$16 sps:$4 sm:$0xff]   ;;  %v2928_v29 = vld [vmem:[%s4414_s3 + $0x148] ss:$16 sps:$4 sm:$0xff]  }
 0x3a7   : > { %1949 = vmatpush1.bf16.msra.mxu0 %v2871_v19  ;;  %1990 = vmatpush1.bf16.msra.mxu1 %v2872_v17  ;;  %v2929_v19 = vld [vmem:[%s4414_s3 + $0x124] ss:$16 sps:$4 sm:$0xff]   ;;  %v2930_v17 = vld [vmem:[%s4414_s3 + $0x12c] ss:$16 sps:$4 sm:$0xff]  }
 0x3a8   : > { %2046 = vmatprep.subr.bf16.mxu0 %v2873_v18  ;;  %2087 = vmatprep.subr.bf16.mxu1 %v2874_v6  ;;  %v2931_v18 = vld [vmem:[%s4414_s3 + $0x120] ss:$16 sps:$4 sm:$0xff]   ;;  %v2932_v6 = vld [vmem:[%s4414_s3 + $0x128] ss:$16 sps:$4 sm:$0xff]  }
 0x3aa   : > { %1967 = vmatmul.mubr.bf16.vlgmr.msra.gmra.mxu0 %v1821_v49  ;;  %2008 = vmatmul.mubr.bf16.vlgmr.msra.gmra.mxu1 %v1821_v49  ;;  %v2920_v49 = vld [vmem:[%s4414_s3 + $0x188] ss:$16 sps:$4 sm:$0xff]  }
 0x3ab   : > { %2047 = vmatpush1.bf16.msra.mxu0 %v2875_v33  ;;  %2088 = vmatpush1.bf16.msra.mxu1 %v2876_v34  ;;  %v2933_v33 = vld [vmem:[%s4414_s3 + $0x104] ss:$16 sps:$4 sm:$0xff]   ;;  %v2934_v34 = vld [vmem:[%s4414_s3 + $0x10c] ss:$16 sps:$4 sm:$0xff]  }
 0x3ac   : > { %2048 = vmatprep.subr.bf16.mxu0 %v2877_v15  ;;  %2089 = vmatprep.subr.bf16.mxu1 %v2878_v21  ;;  %v2935_v15 = vld [vmem:[%s4414_s3 + $0x100] ss:$16 sps:$4 sm:$0xff]   ;;  %v2936_v21 = vld [vmem:[%s4414_s3 + $0x108] ss:$16 sps:$4 sm:$0xff]  }
 0x3af   : > { %2049 = vmatpush1.bf16.msra.mxu0 %v2879_v27  ;;  %2090 = vmatpush1.bf16.msra.mxu1 %v2880_v37 }
 0x3b0   : > { %2050 = vmatprep.subr.bf16.mxu0 %v2881_v22  ;;  %2091 = vmatprep.subr.bf16.mxu1 %v2882_v47 }
 0x3b3   : > { %2051 = vmatpush1.bf16.msra.mxu0 %v2883_v35  ;;  %2092 = vmatpush1.bf16.msra.mxu1 %v2884_v24 }
 0x3b4   : > { %2052 = vmatprep.subr.bf16.mxu0 %v2885_v50  ;;  %2093 = vmatprep.subr.bf16.mxu1 %v2886_v51 }
 0x3b7   : > { %2053 = vmatpush1.bf16.msra.mxu0 %v2887_v52  ;;  %2094 = vmatpush1.bf16.msra.mxu1 %v2888_v53 }
 0x3b8   : > { %2054 = vmatprep.subr.bf16.mxu0 %v2889_v54  ;;  %2095 = vmatprep.subr.bf16.mxu1 %v2890_v55 }
 0x3bb   : > { %2055 = vmatpush1.bf16.msra.mxu0 %v2891_v56  ;;  %2096 = vmatpush1.bf16.msra.mxu1 %v2892_v57 }
 0x3bc   : > { %2056 = vmatprep.subr.bf16.mxu0 %v2893_v58  ;;  %2097 = vmatprep.subr.bf16.mxu1 %v2894_v23 }
 0x3bf   : > { %2057 = vmatpush1.bf16.msra.mxu0 %v2895_v20  ;;  %2098 = vmatpush1.bf16.msra.mxu1 %v2896_v31 }
 0x3c0   : > { %2058 = vmatprep.subr.bf16.mxu0 %v2897_v60  ;;  %2099 = vmatprep.subr.bf16.mxu1 %v2898_v61 }
 0x3c3   : > { %2059 = vmatpush1.bf16.msra.mxu0 %v2899_v63  ;;  %2100 = vmatpush1.bf16.msra.mxu1 %v2900_v0 }
 0x3c4   : > { %2060 = vmatprep.subr.bf16.mxu0 %v2901_v1  ;;  %2101 = vmatprep.subr.bf16.mxu1 %v2902_v2  ;;  %v4740_v1 = vld [vmem:[#allocation74_spill] sm:$0xff] }
 0x3c7   : > { %2061 = vmatpush1.bf16.msra.mxu0 %v2903_v3  ;;  %2102 = vmatpush1.bf16.msra.mxu1 %v2904_v5 }
 0x3c8   : > { %2062 = vmatprep.subr.bf16.mxu0 %v2905_v30  ;;  %2103 = vmatprep.subr.bf16.mxu1 %v2906_v9 }
 0x3cb   : > { %2063 = vmatpush2.bf16.msra.mxu0 %v2907_v10  ;;  %2104 = vmatpush2.bf16.msra.mxu1 %v2908_v11  ;;  %v4741_v11 = vld [vmem:[#allocation76_spill] sm:$0xff] }
 0x3cc   : > { %2064 = vmatprep.subr.bf16.mxu0 %v2909_v13  ;;  %2105 = vmatprep.subr.bf16.mxu1 %v2910_v14 }
 0x3cf   : > { %2065 = vmatpush2.bf16.msra.mxu0 %v2911_v38  ;;  %2106 = vmatpush2.bf16.msra.mxu1 %v2912_v39 }
 0x3d0   : > { %2066 = vmatprep.subr.bf16.mxu0 %v2913_v40  ;;  %2107 = vmatprep.subr.bf16.mxu1 %v2914_v41 }
 0x3d3   : > { %2067 = vmatpush2.bf16.msra.mxu0 %v2915_v42  ;;  %2108 = vmatpush2.bf16.msra.mxu1 %v2916_v43 }
 0x3d4   : > { %2068 = vmatprep.subr.bf16.mxu0 %v2917_v45  ;;  %2109 = vmatprep.subr.bf16.mxu1 %v2918_v46 }
 0x3d7   : > { %2069 = vmatpush2.bf16.msra.mxu0 %v2919_v48  ;;  %2110 = vmatpush2.bf16.msra.mxu1 %v2920_v49  ;;  %v4742_v49 = vld [vmem:[#allocation77_spill] sm:$0xff] }
 0x3d8   : > { %2070 = vmatprep.subr.bf16.mxu0 %v2921_v32  ;;  %2111 = vmatprep.subr.bf16.mxu1 %v2922_v26  ;;  %v4743_v26 = vld [vmem:[#allocation75_spill] sm:$0xff] }
 0x3db   : > { %2071 = vmatpush2.bf16.msra.mxu0 %v2923_v36  ;;  %2112 = vmatpush2.bf16.msra.mxu1 %v2924_v7 }
 0x3dc   : > { %2072 = vmatprep.subr.bf16.mxu0 %v2925_v28  ;;  %2113 = vmatprep.subr.bf16.mxu1 %v2926_v4 }
 0x3df   : > { %2073 = vmatpush2.bf16.msra.mxu0 %v2927_v16  ;;  %2114 = vmatpush2.bf16.msra.mxu1 %v2928_v29 }
 0x3e0   : > { %2074 = vmatprep.subr.bf16.mxu0 %v2929_v19  ;;  %2115 = vmatprep.subr.bf16.mxu1 %v2930_v17 }
 0x3e3   : > { %2075 = vmatpush2.bf16.msra.mxu0 %v2931_v18  ;;  %2116 = vmatpush2.bf16.msra.mxu1 %v2932_v6 }
 0x3e4   : > { %2076 = vmatprep.subr.bf16.mxu0 %v2933_v33  ;;  %2117 = vmatprep.subr.bf16.mxu1 %v2934_v34 }
 0x3e7   : > { %2077 = vmatpush2.bf16.msra.mxu0 %v2935_v15  ;;  %2118 = vmatpush2.bf16.msra.mxu1 %v2936_v21 }
 0x44a   : > { %v1857_v27 = vpop.f32.mrf.mxu0  ;;  %v1898_v37 = vpop.f32.mrf.mxu1 }
 0x44b   : > { %v1858_v22 = vadd.f32 %v1857_v27, %v4732_v25  ;;  %v1899_v23 = vadd.f32 %v1898_v37, %v4735_v12 }
 0x44c   : > { %v1859_v47 = vpop.f32.mrf.mxu0  ;;  %v1900_v35 = vpop.f32.mrf.mxu1 }
 0x44d   : > { %v2441_v24 = vmul.f32 -1.442695, %v1858_v22  ;;  %v1860_v50 = vadd.f32 %v1859_v47, %v4733_v62  ;;  %v1901_v56 = vadd.f32 %v1900_v35, %v4734_v8 }
 0x44e   : > { %v1861_v51 = vpop.f32.mrf.mxu0  ;;  %v1902_v52 = vpop.f32.mrf.mxu1 }
 0x44f   : > { %2793 = vpow2.f32 %v2441_v24  ;;  %v2442_v53 = vmul.f32 -1.442695, %v1860_v50  ;;  %v2443_v57 = vmul.f32 -1.442695, %v1901_v56 }
 0x450   : > { %v1862_v54 = vpop.f32.mrf.mxu0  ;;  %v1903_v55 = vpop.f32.mrf.mxu1 }
 0x451   : > { %2795 = vpow2.f32 %v2442_v53 }
 0x452   : > { %2797 = vpow2.f32 %v2443_v57 }
 0x45c   : > { %v2794_v58 = vpop.eup %2793 }
 0x45d   : > { %v1908_v20 = vadd.f32 1.0, %v2794_v58 }
 0x45e   : > { %v2796_v31 = vpop.eup %2795 }
 0x45f   : > { %2799 = vrcp.f32 %v1908_v20  ;;  %v1914_v60 = vadd.f32 1.0, %v2796_v31  ;;  %v2798_v0 = vpop.eup %2797 }
 0x460   : > { %2801 = vtanh.f32 %v1899_v23  ;;  %v1921_v38 = vadd.f32 1.0, %v2798_v0 }
 0x461   : > { %2803 = vrcp.f32 %v1914_v60 }
 0x46a   : > { %v1968_v61 = vpop.f32.mrf.mxu0  ;;  %v2009_v63 = vpop.f32.mrf.mxu1 }
 0x46b   : > { %v2016_v2 = vadd.f32 %v1968_v61, %v4740_v1  ;;  %v2018_v36 = vadd.f32 %v2009_v63, %v4743_v26 }
 0x46c   : > { %v2800_v3 = vpop.eup %2799  ;;  %v1970_v5 = vpop.f32.mrf.mxu0 }
 0x46d   : > { %v2011_v30 = vpop.f32.mrf.mxu1  ;;  %v2802_v9 = vpop.eup %2801  ;;  %v2444_v10 = vmul.f32 -1.442695, %v2016_v2  ;;  %v2017_v13 = vadd.f32 %v1970_v5, %v4741_v11 }
 0x46e   : > { %v2804_v14 = vpop.eup %2803  ;;  %v1972_v39 = vpop.f32.mrf.mxu0  ;;  %v1925_v41 = vmul.f32 %v2802_v9, %v2800_v3  ;;  %v2019_v32 = vadd.f32 %v2011_v30, %v4742_v49 }
 0x46f   : > { %v2013_v40 = vpop.f32.mrf.mxu1  ;;  %v1924_v42 = vmul.f32 %v2804_v14, %v4085_v59  ;;  %2805 = vpow2.f32 %v2444_v10  ;;  %v2445_v43 = vmul.f32 -1.442695, %v2017_v13 }
 0x470   : > { %v1973_v45 = vpop.f32.mrf.mxu0  ;;  %v2446_v7 = vmul.f32 -1.442695, %v2019_v32 }
 0x471   : > { %v2014_v46 = vpop.f32.mrf.mxu1  ;;  %2807 = vpow2.f32 %v2445_v43  ;;  %v4345_v48 = vadd.f32 %v1925_v41, %v1924_v42 }
 0x472   : > { %2809 = vrcp.f32 %v1921_v38 }
 0x473   : > { %2811 = vtanh.f32 %v4345_v48 }
 0x474   : > { %2813 = vtanh.f32 %v2018_v36 }
 0x475   : > { %2815 = vpow2.f32 %v2446_v7 }
 0x47c   : > { %v2806_v28 = vpop.eup %2805 }
 0x47d   : > { %v2023_v4 = vadd.f32 1.0, %v2806_v28 }
 0x47e   : > { %v2808_v16 = vpop.eup %2807 }
 0x47f   : > { %v2810_v59 = vpop.eup %2809  ;;  %2817 = vrcp.f32 %v2023_v4  ;;  %v2029_v29 = vadd.f32 1.0, %v2808_v16 }
 0x480   : > { %v2812_v19 = vpop.eup %2811 }
 0x481   : > { %2819 = vrcp.f32 %v2029_v29  ;;  %v1928_v17 = vmul.f32 %v2812_v19, %v2810_v59  ;;  %v2814_v6 = vpop.eup %2813 }
 0x482   : > { %v2816_v33 = vpop.eup %2815 }
 0x483   : > { %v2045_v18 = vpack.c.bf16 %v1928_v17, %v1928_v17  ;;  %v2036_v27 = vadd.f32 1.0, %v2816_v33 }
 0x485   : > { %2078 = vmatprep.mubr.bf16.mxu0 %v2045_v18  ;;  %2119 = vmatprep.mubr.bf16.mxu1 %v2045_v18  ;;  %2821 = vrcp.f32 %v2036_v27 }
 0x48c   : > { %v2818_v34 = vpop.eup %2817 }
 0x48d   : > { %v2040_v15 = vmul.f32 %v2818_v34, %v2814_v6 }
 0x48e   : > { %v2820_v21 = vpop.eup %2819 }
 0x48f   : > { %v2039_v37 = vmul.f32 %v2820_v21, %v4091_v44 }
 0x491   : > { %v2041_v22 = vadd.f32 %v2040_v15, %v2039_v37 }
 0x492   : > { %v2822_v47 = vpop.eup %2821 }
 0x493   : > { %2153 = vst [vmem:[#allocation3 + $0x8] sm:$0xff] %v2041_v22  ;;  %2823 = vtanh.f32 %v2041_v22 }
 0x4a0   : > { %v2824_v35 = vpop.eup %2823 }
 0x4a1   : > { %v2043_v24 = vmul.f32 %v2824_v35, %v2822_v47 }
 0x4a3   : > { %v2044_v50 = vpack.c.bf16 %v2043_v24, %v2043_v24  ;;  %2152 = vst [vmem:[#allocation2] sm:$0xff] %v2043_v24 }
 0x4a5   : > { %2079 = vmatmul.mubr.bf16.vlgmr.msra.gmra.mxu0 %v2044_v50  ;;  %2120 = vmatmul.mubr.bf16.vlgmr.msra.gmra.mxu1 %v2044_v50 }
 0x565   : > { %v2080_v51 = vpop.f32.mrf.mxu0  ;;  %v2121_v52 = vpop.f32.mrf.mxu1 }
 0x566   : > { %v2081_v53 = vadd.f32 %v2080_v51, %v4732_v25  ;;  %v2122_v0 = vadd.f32 %v2121_v52, %v4735_v12 }
 0x567   : > { %v2082_v54 = vpop.f32.mrf.mxu0  ;;  %v2123_v55 = vpop.f32.mrf.mxu1 }
 0x568   : > { %v2447_v56 = vmul.f32 -1.442695, %v2081_v53  ;;  %v2083_v44 = vadd.f32 %v2082_v54, %v4733_v62  ;;  %v2124_v60 = vadd.f32 %v2123_v55, %v4734_v8 }
 0x569   : > { %v2084_v57 = vpop.f32.mrf.mxu0  ;;  %v2125_v58 = vpop.f32.mrf.mxu1 }
 0x56a   : > { %2825 = vpow2.f32 %v2447_v56  ;;  %v2448_v23 = vmul.f32 -1.442695, %v2083_v44  ;;  %v2449_v61 = vmul.f32 -1.442695, %v2124_v60 }
 0x56b   : > { %v2085_v20 = vpop.f32.mrf.mxu0  ;;  %v2126_v31 = vpop.f32.mrf.mxu1 }
 0x56c   : > { %2827 = vpow2.f32 %v2448_v23 }
 0x56d   : > { %2829 = vpow2.f32 %v2449_v61 }
 0x577   : > { %v2826_v63 = vpop.eup %2825 }
 0x578   : > { %v2131_v1 = vadd.f32 1.0, %v2826_v63 }
 0x579   : > { %v2828_v25 = vpop.eup %2827 }
 0x57a   : > { %2831 = vrcp.f32 %v2131_v1  ;;  %v2137_v2 = vadd.f32 1.0, %v2828_v25  ;;  %v2830_v62 = vpop.eup %2829 }
 0x57b   : > { %2833 = vtanh.f32 %v2122_v0  ;;  %v2144_v9 = vadd.f32 1.0, %v2830_v62 }
 0x57c   : > { %2835 = vrcp.f32 %v2137_v2 }
 0x57d   : > { %2837 = vrcp.f32 %v2144_v9 }
 0x587   : > { %v2832_v3 = vpop.eup %2831 }
 0x588   : > { %v2834_v5 = vpop.eup %2833 }
 0x589   : > { %v2836_v30 = vpop.eup %2835  ;;  %v2148_v10 = vmul.f32 %v2834_v5, %v2832_v3 }
 0x58a   : > { %v2147_v11 = vmul.f32 %v2836_v30, %v4345_v48  ;;  %v2838_v12 = vpop.eup %2837 }
 0x58c   : > { %v2149_v8 = vadd.f32 %v2148_v10, %v2147_v11 }
 0x58e   : > { %2839 = vtanh.f32 %v2149_v8  ;;  %2155 = vst [vmem:[#allocation3] sm:$0xff] %v2149_v8 }
 0x59a   : > { %2159 = sbr.rel (%p2450_p5) target bundleno = 1700 (0x6a4), region = 60 }
 0x59b   : > { %v2840_v13 = vpop.eup %2839 }
 0x59c   : > { %v2151_v14 = vmul.f32 %v2840_v13, %v2838_v12 }
 0x59e   : > { %2154 = vst [vmem:[#allocation2 + $0x8] sm:$0xff] %v2151_v14 }
 0x59f   : > { %v2175_v38 = vld [vmem:[%s4417_s6 + $0x78] sm:$0xff]  ;;  %v2951_v39 = vmov 0.0   ;;  %v2174_v40 = vld [vmem:[%s4417_s6 + $0x70] sm:$0xff]  ;;  %vm2952_vm0 = vmmov 0   ;;  %v2173_v41 = vld [vmem:[%s4417_s6 + $0x68] sm:$0xff]  ;;  %vm2259_vm1 = vcmask 7168  }
 0x5a0   : > { %2472 = vmatprep.subr.mxu0 %v2951_v39  ;;  %2504 = vmatprep.mubr.msk.f32.mxu0 %vm2952_vm0, %v2951_v39  ;;  %v2172_v42 = vld [vmem:[%s4417_s6 + $0x60] sm:$0xff]  ;;  %v2171_v43 = vld [vmem:[%s4417_s6 + $0x58] sm:$0xff]  ;;  %v2170_v45 = vld [vmem:[%s4417_s6 + $0x50] sm:$0xff] }
 0x5a1   : > { %2473 = vmatpush3.msra.mxu0 %v2175_v38  ;;  %v2169_v46 = vld [vmem:[%s4417_s6 + $0x48] sm:$0xff]  ;;  %v2168_v48 = vld [vmem:[%s4417_s6 + $0x40] sm:$0xff]  ;;  %v2167_v49 = vld [vmem:[%s4417_s6 + $0x38] sm:$0xff] }
 0x5a2   : > { %2474 = vmatprep.subr.mxu0 %v2951_v39  ;;  %v2166_v32 = vld [vmem:[%s4417_s6 + $0x30] sm:$0xff]  ;;  %v2165_v26 = vld [vmem:[%s4417_s6 + $0x28] sm:$0xff]  ;;  %v2164_v36 = vld [vmem:[%s4417_s6 + $0x20] sm:$0xff] }
 0x5a3   : > { %2475 = vmatpush3.msra.mxu0 %v2174_v40  ;;  %v2163_v7 = vld [vmem:[%s4417_s6 + $0x18] sm:$0xff]  ;;  %v2162_v28 = vld [vmem:[%s4417_s6 + $0x10] sm:$0xff]  ;;  %v2161_v4 = vld [vmem:[%s4417_s6 + $0x8] sm:$0xff] }
 0x5a4   : > { %2476 = vmatprep.subr.mxu0 %v2951_v39  ;;  %v2160_v16 = vld [vmem:[%s4417_s6] sm:$0xff] }
 0x5a5   : > { %2477 = vmatpush3.msra.mxu0 %v2173_v41  ;;  %v2451_v59 = vld [vmem:[#allocation5] ss:$0 sm:$0xff] }
 0x5a6   : > { %2478 = vmatprep.subr.mxu0 %v2951_v39 }
 0x5a7   : > { %2479 = vmatpush3.msra.mxu0 %v2172_v42 }
 0x5a8   : > { %2480 = vmatprep.subr.mxu0 %v2951_v39 }
 0x5a9   : > { %2481 = vmatpush3.msra.mxu0 %v2171_v43 }
 0x5aa   : > { %2482 = vmatprep.subr.mxu0 %v2951_v39 }
 0x5ab   : > { %2483 = vmatpush3.msra.mxu0 %v2170_v45 }
 0x5ac   : > { %2484 = vmatprep.subr.mxu0 %v2951_v39 }
 0x5ad   : > { %2485 = vmatpush3.msra.mxu0 %v2169_v46 }
 0x5ae   : > { %2486 = vmatprep.subr.mxu0 %v2951_v39 }
 0x5af   : > { %2487 = vmatpush3.msra.mxu0 %v2168_v48 }
 0x5b0   : > { %2488 = vmatprep.subr.mxu0 %v2951_v39 }
 0x5b1   : > { %2489 = vmatpush3.msra.mxu0 %v2167_v49 }
 0x5b2   : > { %2490 = vmatprep.subr.mxu0 %v2951_v39 }
 0x5b3   : > { %2491 = vmatpush3.msra.mxu0 %v2166_v32 }
 0x5b4   : > { %2492 = vmatprep.subr.mxu0 %v2951_v39 }
 0x5b5   : > { %2493 = vmatpush3.msra.mxu0 %v2165_v26 }
 0x5b6   : > { %2494 = vmatprep.subr.mxu0 %v2951_v39 }
 0x5b7   : > { %2495 = vmatpush3.msra.mxu0 %v2164_v36 }
 0x5b8   : > { %2496 = vmatprep.subr.mxu0 %v2951_v39 }
 0x5b9   : > { %2497 = vmatpush3.msra.mxu0 %v2163_v7 }
 0x5ba   : > { %2498 = vmatprep.subr.mxu0 %v2951_v39 }
 0x5bb   : > { %2499 = vmatpush3.msra.mxu0 %v2162_v28 }
 0x5bc   : > { %2500 = vmatprep.subr.mxu0 %v2951_v39 }
 0x5bd   : > { %2501 = vmatpush3.msra.mxu0 %v2161_v4 }
 0x5be   : > { %2502 = vmatprep.subr.mxu0 %v2951_v39 }
 0x5bf   : > { %2503 = vmatpush3.msra.mxu0 %v2160_v16 }
 0x5c0   : > { %2505 = vmatmul.mubr.f32.vlgmr.msra.gmra.mxu0 %v2151_v14 }
 0x680   : > { %v2249_v29 = vpop.f32.mrf.mxu0 }
 0x681   : > { %v2250_v19 = vadd.f32 %v2451_v59, %v2249_v29 }
 0x682   : > { %v2506_v17 = vpop.f32.mrf.mxu0 }
 0x683   : > { %v2452_v18 = vmul.f32 -1.442695, %v2250_v19 }
 0x685   : > { %2937 = vpow2.f32 %v2452_v18 }
 0x692   : > { %v2938_v6 = vpop.eup %2937 }
 0x693   : > { %v2256_v33 = vadd.f32 1.0, %v2938_v6 }
 0x695   : > { %2939 = vrcp.f32 %v2256_v33 }
 0x6a2   : > { %v2940_v34 = vpop.eup %2939 }
 0x6a3   : > { %2260 = vst.msk [vmem:[%s4419_s8] sm:$0xff] %vm2259_vm1, %v2940_v34 }
 0x6a4 PF: > { %s20_s29 = sadd.s32 1, %s2947_s29  }
 0x6a5   : > { %p17_p6 = scmp.ge.s32.totalorder %s20_s29, 4  }
 0x6a7   :  { %19 = sbr.rel (!%p17_p6) target bundleno = 3 (0x3), region = 91 }

</bundles_post_ra>
